<compile_context>
chip_gen: v7x
topology: tpu7x:2x2x1
jax: 0.10.0
libtpu: 0.0.40
codegen_flags: <defaults>
</compile_context>

<pallas_src>
import functools

import jax
import jax.numpy as jnp
from jax.experimental import pallas as pl
from jax.experimental.pallas import tpu as pltpu

# ---------------- model config (small synthetic ProtBERT) ----------------
VOCAB = 30           # ProtBERT vocab size
VOCAB_PAD = 128      # decoder output padded to a lane-dense width
HIDDEN = 128
NUM_LAYERS = 2
NUM_HEADS = 4
HEAD_DIM = HIDDEN // NUM_HEADS
FFN = 256
MAX_POS = 64
LN_EPS = 1e-12


def _pick_tm(M, cap=256):
    """Largest row tile <= cap that divides M; if that leaves a single grid
    step, split once so the 'parallel' axis has >= 2 steps (v7x megacore)."""
    if M <= cap:
        tm = M
    else:
        tm = cap
        while M % tm:
            tm -= 8
    if M // tm < 2 and M % 16 == 0:
        tm = M // 2
    return tm


# ---------------------------------------------------------------------------
# Fused linear kernel:  y = x @ w + b  [-> GELU] [-> + residual] [-> LayerNorm]
# grid = (M // tm,)  -- full-K matmul, no accumulator, single store.
# ---------------------------------------------------------------------------
def _fused_linear_kernel(x_ref, w_ref, b_ref, *rest,
                         gelu, has_residual, has_ln, eps):
    idx = 0
    r_ref = g_ref = bt_ref = None
    if has_residual:
        r_ref = rest[idx]
        idx += 1
    if has_ln:
        g_ref, bt_ref = rest[idx], rest[idx + 1]
        idx += 2
    o_ref = rest[idx]

    y = jnp.dot(x_ref[...], w_ref[...], preferred_element_type=jnp.float32)
    y = y + b_ref[...].astype(jnp.float32)
    if gelu:
        # TODO(synk): HF BERT/ProtBERT "gelu" is erf-based; tanh approximation
        # is used here (erf has no guaranteed Mosaic lowering).
        y = jax.nn.gelu(y)
    if has_residual:
        y = y + r_ref[...].astype(jnp.float32)
    if has_ln:
        mean = jnp.mean(y, axis=-1, keepdims=True)
        var = jnp.mean(jnp.square(y - mean), axis=-1, keepdims=True)
        y = (y - mean) * jax.lax.rsqrt(var + eps)
        y = y * g_ref[...].astype(jnp.float32) + bt_ref[...].astype(jnp.float32)
    o_ref[...] = y.astype(o_ref.dtype)


def fused_linear(x, w, b, *, residual=None, gelu=False, ln=None,
                 out_dtype=jnp.bfloat16, tm=None):
    """x:[M,K] bf16  w:[K,N] bf16  b:[N] f32. Optional residual:[M,N] and
    ln=(gamma, beta) applied after bias/GELU/residual."""
    M, K = x.shape
    N = w.shape[1]
    if tm is None:
        tm = _pick_tm(M)
    assert M % tm == 0, (M, tm)
    grid = (M // tm,)

    has_residual = residual is not None
    has_ln = ln is not None

    in_specs = [
        pl.BlockSpec((tm, K), lambda i: (i, 0)),
        pl.BlockSpec((K, N), lambda i: (0, 0)),   # resident across M steps
        pl.BlockSpec((1, N), lambda i: (0, 0)),
    ]
    args = [x, w, b.reshape(1, N)]
    if has_residual:
        in_specs.append(pl.BlockSpec((tm, N), lambda i: (i, 0)))
        args.append(residual)
    if has_ln:
        gamma, beta = ln
        in_specs.append(pl.BlockSpec((1, N), lambda i: (0, 0)))
        in_specs.append(pl.BlockSpec((1, N), lambda i: (0, 0)))
        args.append(gamma.reshape(1, N))
        args.append(beta.reshape(1, N))

    kernel = functools.partial(_fused_linear_kernel, gelu=gelu,
                               has_residual=has_residual, has_ln=has_ln,
                               eps=LN_EPS)
    return pl.pallas_call(
        kernel,
        out_shape=jax.ShapeDtypeStruct((M, N), out_dtype),
        grid=grid,
        in_specs=in_specs,
        out_specs=pl.BlockSpec((tm, N), lambda i: (i, 0)),
        compiler_params=pltpu.CompilerParams(
            dimension_semantics=("parallel",)),
    )(*args)


# ---------------------------------------------------------------------------
# Fused FFN kernel: y = LN( x + (GELU(x @ w1 + b1) @ w2 + b2) )
# The [tm, FFN] intermediate never leaves VMEM/registers.
# ---------------------------------------------------------------------------
def _ffn_kernel(x_ref, w1_ref, b1_ref, w2_ref, b2_ref, g_ref, bt_ref, o_ref,
                *, eps):
    x_bf = x_ref[...]
    h = jnp.dot(x_bf, w1_ref[...], preferred_element_type=jnp.float32)
    h = jax.nn.gelu(h + b1_ref[...].astype(jnp.float32))
    y = jnp.dot(h.astype(w2_ref.dtype), w2_ref[...],
                preferred_element_type=jnp.float32)
    y = y + b2_ref[...].astype(jnp.float32) + x_bf.astype(jnp.float32)
    mean = jnp.mean(y, axis=-1, keepdims=True)
    var = jnp.mean(jnp.square(y - mean), axis=-1, keepdims=True)
    y = (y - mean) * jax.lax.rsqrt(var + eps)
    y = y * g_ref[...].astype(jnp.float32) + bt_ref[...].astype(jnp.float32)
    o_ref[...] = y.astype(o_ref.dtype)


def fused_ffn(x, w1, b1, w2, b2, gamma, beta, *, out_dtype=jnp.bfloat16,
              tm=None):
    M, H = x.shape
    F_ = w1.shape[1]
    if tm is None:
        tm = _pick_tm(M)
    assert M % tm == 0, (M, tm)
    return pl.pallas_call(
        functools.partial(_ffn_kernel, eps=LN_EPS),
        out_shape=jax.ShapeDtypeStruct((M, H), out_dtype),
        grid=(M // tm,),
        in_specs=[
            pl.BlockSpec((tm, H), lambda i: (i, 0)),
            pl.BlockSpec((H, F_), lambda i: (0, 0)),
            pl.BlockSpec((1, F_), lambda i: (0, 0)),
            pl.BlockSpec((F_, H), lambda i: (0, 0)),
            pl.BlockSpec((1, H), lambda i: (0, 0)),
            pl.BlockSpec((1, H), lambda i: (0, 0)),
            pl.BlockSpec((1, H), lambda i: (0, 0)),
        ],
        out_specs=pl.BlockSpec((tm, H), lambda i: (i, 0)),
        compiler_params=pltpu.CompilerParams(
            dimension_semantics=("parallel",)),
    )(x, w1, b1.reshape(1, F_), w2, b2.reshape(1, H),
      gamma.reshape(1, H), beta.reshape(1, H))


# ---------------------------------------------------------------------------
# Add + LayerNorm kernel (embedding LN): LN(x + r) * gamma + beta
# ---------------------------------------------------------------------------
def _add_ln_kernel(x_ref, r_ref, g_ref, b_ref, o_ref, *, eps):
    y = x_ref[...].astype(jnp.float32) + r_ref[...].astype(jnp.float32)
    mean = jnp.mean(y, axis=-1, keepdims=True)
    var = jnp.mean(jnp.square(y - mean), axis=-1, keepdims=True)
    y = (y - mean) * jax.lax.rsqrt(var + eps)
    o_ref[...] = (y * g_ref[...] + b_ref[...]).astype(o_ref.dtype)


def add_layernorm(x, r, gamma, beta, *, out_dtype=jnp.bfloat16, tm=None):
    M, H = x.shape
    if tm is None:
        tm = _pick_tm(M)
    assert M % tm == 0, (M, tm)
    return pl.pallas_call(
        functools.partial(_add_ln_kernel, eps=LN_EPS),
        out_shape=jax.ShapeDtypeStruct((M, H), out_dtype),
        grid=(M // tm,),
        in_specs=[
            pl.BlockSpec((tm, H), lambda i: (i, 0)),
            pl.BlockSpec((tm, H), lambda i: (i, 0)),
            pl.BlockSpec((1, H), lambda i: (0, 0)),
            pl.BlockSpec((1, H), lambda i: (0, 0)),
        ],
        out_specs=pl.BlockSpec((tm, H), lambda i: (i, 0)),
        compiler_params=pltpu.CompilerParams(dimension_semantics=("parallel",)),
    )(x, r, gamma.reshape(1, H), beta.reshape(1, H))


# ---------------------------------------------------------------------------
# Fused QKV-projection + multi-head attention kernel.
# One grid step per batch element: qkv = x @ wqkv + bqkv computed in-kernel,
# heads handled with a static unroll, per-head result stored straight into the
# output slice (no concatenate), mask broadcast hoisted out of the head loop.
# ---------------------------------------------------------------------------
def _attn_qkv_kernel(x_ref, w_ref, b_ref, m_ref, o_ref, *, scale):
    xb = x_ref[0]                                            # [S, H] bf16
    qkv = jnp.dot(xb, w_ref[...], preferred_element_type=jnp.float32)
    qkv = (qkv + b_ref[...].astype(jnp.float32)).astype(jnp.bfloat16)  # [S,3H]
    S = xb.shape[0]
    bias = jnp.broadcast_to(m_ref[0].astype(jnp.float32), (S, S))  # hoisted
    for h in range(NUM_HEADS):                               # static unroll
        lo = h * HEAD_DIM
        qh = qkv[:, lo:lo + HEAD_DIM]                        # [S, dh]
        kh = qkv[:, HIDDEN + lo:HIDDEN + lo + HEAD_DIM]      # [S, dh]
        vh = qkv[:, 2 * HIDDEN + lo:2 * HIDDEN + lo + HEAD_DIM]
        # q @ k^T without an explicit transpose (contract last dims).
        s = jax.lax.dot_general(qh, kh, (((1,), (1,)), ((), ())),
                                preferred_element_type=jnp.float32)
        s = s * scale + bias
        s = s - jnp.max(s, axis=-1, keepdims=True)
        p = jnp.exp(s)
        p = p * pl.reciprocal(jnp.sum(p, axis=-1, keepdims=True), approx=True)
        ctx = jnp.dot(p.astype(vh.dtype), vh,
                      preferred_element_type=jnp.float32)
        o_ref[0, :, lo:lo + HEAD_DIM] = ctx.astype(o_ref.dtype)


def attention(x, wqkv, bqkv, mask_bias):
    """x:[B,S,H] bf16, wqkv:[H,3H] bf16, bqkv:[3H] f32,
    mask_bias:[B,1,S] additive f32  ->  [B,S,H] bf16."""
    B, S, H = x.shape
    H3 = wqkv.shape[1]
    scale = 1.0 / float(HEAD_DIM) ** 0.5
    return pl.pallas_call(
        functools.partial(_attn_qkv_kernel, scale=scale),
        out_shape=jax.ShapeDtypeStruct((B, S, H), jnp.bfloat16),
        grid=(B,),
        in_specs=[
            pl.BlockSpec((1, S, H), lambda b: (b, 0, 0)),
            pl.BlockSpec((H, H3), lambda b: (0, 0)),    # resident across steps
            pl.BlockSpec((1, H3), lambda b: (0, 0)),
            pl.BlockSpec((1, 1, S), lambda b: (b, 0, 0)),
        ],
        out_specs=pl.BlockSpec((1, S, H), lambda b: (b, 0, 0)),
        compiler_params=pltpu.CompilerParams(dimension_semantics=("parallel",)),
    )(x, wqkv, bqkv.reshape(1, H3), mask_bias)


# ------------------------- parameter construction ------------------------
def init_params(key):
    def nrm(k, shape):
        return 0.02 * jax.random.normal(k, shape, jnp.float32)

    keys = iter(jax.random.split(key, 8 + NUM_LAYERS * 8))
    params = {
        "word_emb": nrm(next(keys), (VOCAB, HIDDEN)),
        "pos_emb": nrm(next(keys), (MAX_POS, HIDDEN)),
        "type_emb": nrm(next(keys), (2, HIDDEN)),
        "emb_ln_g": jnp.ones((HIDDEN,), jnp.float32),
        "emb_ln_b": jnp.zeros((HIDDEN,), jnp.float32),
        "layers": [],
    }
    for _ in range(NUM_LAYERS):
        wq = nrm(next(keys), (HIDDEN, HIDDEN))
        wk = nrm(next(keys), (HIDDEN, HIDDEN))
        wv = nrm(next(keys), (HIDDEN, HIDDEN))
        layer = {
            # fused Q|K|V projection weight
            "wqkv": jnp.concatenate([wq, wk, wv], axis=1).astype(jnp.bfloat16),
            "bqkv": jnp.zeros((3 * HIDDEN,), jnp.float32),
            "wo": nrm(next(keys), (HIDDEN, HIDDEN)).astype(jnp.bfloat16),
            "bo": jnp.zeros((HIDDEN,), jnp.float32),
            "ln1_g": jnp.ones((HIDDEN,), jnp.float32),
            "ln1_b": jnp.zeros((HIDDEN,), jnp.float32),
            "w1": nrm(next(keys), (HIDDEN, FFN)).astype(jnp.bfloat16),
            "b1": jnp.zeros((FFN,), jnp.float32),
            "w2": nrm(next(keys), (FFN, HIDDEN)).astype(jnp.bfloat16),
            "b2": jnp.zeros((HIDDEN,), jnp.float32),
            "ln2_g": jnp.ones((HIDDEN,), jnp.float32),
            "ln2_b": jnp.zeros((HIDDEN,), jnp.float32),
        }
        params["layers"].append(layer)
    params["mlm_dense_w"] = nrm(next(keys), (HIDDEN, HIDDEN)).astype(jnp.bfloat16)
    params["mlm_dense_b"] = jnp.zeros((HIDDEN,), jnp.float32)
    params["mlm_ln_g"] = jnp.ones((HIDDEN,), jnp.float32)
    params["mlm_ln_b"] = jnp.zeros((HIDDEN,), jnp.float32)
    # Decoder tied (by value) to word embeddings, padded to 128 lanes.
    dec_w = params["word_emb"].T                                  # [H, VOCAB]
    params["decoder_w"] = jnp.pad(
        dec_w, ((0, 0), (0, VOCAB_PAD - VOCAB))).astype(jnp.bfloat16)
    params["decoder_b"] = jnp.zeros((VOCAB_PAD,), jnp.float32)
    return params


# ----------------------------- forward pass ------------------------------
def protbert_forward(params, input_ids, attention_mask=None):
    B, S = input_ids.shape
    assert S <= MAX_POS, f"sequence length {S} exceeds MAX_POS={MAX_POS}"
    if attention_mask is None:
        attention_mask = jnp.ones((B, S), jnp.int32)
    M = B * S

    # Embeddings: gather (pure DMA) instead of one-hot matmul.
    word = jnp.take(params["word_emb"], input_ids.reshape(-1), axis=0)   # [M,H]
    pos = params["pos_emb"][:S]
    typ = params["type_emb"][0]
    extra = jnp.broadcast_to(pos[None] + typ, (B, S, HIDDEN)).reshape(M, HIDDEN)
    x = add_layernorm(word, extra, params["emb_ln_g"], params["emb_ln_b"])  # bf16

    mask_bias = ((1.0 - attention_mask.astype(jnp.float32)) * -1e9).reshape(B, 1, S)

    for layer in params["layers"]:
        # Fused QKV projection + attention: one call, qkv never hits HBM.
        ctx = attention(x.reshape(B, S, HIDDEN), layer["wqkv"], layer["bqkv"],
                        mask_bias)                                       # [B,S,H]
        # Output projection + residual + LayerNorm1 (single call).
        x = fused_linear(ctx.reshape(M, HIDDEN), layer["wo"], layer["bo"],
                         residual=x, ln=(layer["ln1_g"], layer["ln1_b"]))
        # FFN up (+GELU) + down (+residual) + LayerNorm2 fused in one call.
        x = fused_ffn(x, layer["w1"], layer["b1"], layer["w2"], layer["b2"],
                      layer["ln2_g"], layer["ln2_b"])

    # MLM head: dense + GELU + LN fused, then lane-padded decoder.
    t = fused_linear(x, params["mlm_dense_w"], params["mlm_dense_b"],
                     gelu=True, ln=(params["mlm_ln_g"], params["mlm_ln_b"]))
    logits = fused_linear(t, params["decoder_w"], params["decoder_b"],
                          out_dtype=jnp.float32)                         # [M,128]
    return logits[:, :VOCAB].reshape(B, S, VOCAB)


class Generator:
    """JAX/Pallas equivalent of the PyTorch Generator wrapper."""

    def __init__(self, params):
        self.params = params
        self._fwd = jax.jit(functools.partial(protbert_forward, params))

    def forward(self, input_ids, attention_mask=None):
        if attention_mask is None:
            attention_mask = jnp.ones(input_ids.shape, jnp.int32)
        return self._fwd(input_ids, attention_mask)

    # TODO(synk): `generate()` (iterative top-k keep / scatter refill loop) is
    # a host-side sampling routine, not a kernel hot path; only forward() is
    # implemented here.


# --------------------------------- main ----------------------------------
if __name__ == "__main__":
    key = jax.random.PRNGKey(0)
    pkey, ikey = jax.random.split(key)
    params = init_params(pkey)

    B, S = 2, 16
    input_ids = jax.random.randint(ikey, (B, S), 0, VOCAB, dtype=jnp.int32)
    attention_mask = jnp.ones((B, S), jnp.int32)

    gen = Generator(params)
    logits = gen.forward(input_ids, attention_mask)
    jax.block_until_ready(logits)

    assert logits.shape == (B, S, VOCAB), logits.shape
    assert logits.dtype == jnp.float32
    assert bool(jnp.all(jnp.isfinite(logits)))
    print("KERNEL_OK")
</pallas_src>

<mosaic_0001>
module attributes {stable_mosaic.version = 11 : i64} {
  func.func @_fused_linear_kernel(%arg0: i32, %arg1: memref<16x128xbf16, #tpu.memory_space<vmem>>, %arg2: memref<128x128xbf16, #tpu.memory_space<vmem>>, %arg3: memref<1x128xf32, #tpu.memory_space<vmem>>, %arg4: memref<16x128xbf16, #tpu.memory_space<vmem>>, %arg5: memref<1x128xf32, #tpu.memory_space<vmem>>, %arg6: memref<1x128xf32, #tpu.memory_space<vmem>>, %arg7: memref<16x128xbf16, #tpu.memory_space<vmem>>) attributes {dimension_semantics = [#tpu.dimension_semantics<parallel>], iteration_bounds = array<i64: 2>, scalar_prefetch = 0 : i64, scratch_operands = 0 : i64, tpu.core_type = #tpu.core_type<tc>, window_params = [{transform_indices = @transform_0, window_bounds = array<i64: 16, 128>}, {pipeline_mode = #tpu.pipeline_mode<synchronous>, transform_indices = @transform_1, window_bounds = array<i64: 128, 128>}, {pipeline_mode = #tpu.pipeline_mode<synchronous>, transform_indices = @transform_2, window_bounds = array<i64: 1, 128>}, {transform_indices = @transform_3, window_bounds = array<i64: 16, 128>}, {pipeline_mode = #tpu.pipeline_mode<synchronous>, transform_indices = @transform_4, window_bounds = array<i64: 1, 128>}, {pipeline_mode = #tpu.pipeline_mode<synchronous>, transform_indices = @transform_5, window_bounds = array<i64: 1, 128>}, {transform_indices = @transform_6, window_bounds = array<i64: 16, 128>}]} {
    %c0 = arith.constant 0 : index
    %c0_0 = arith.constant 0 : index
    %0 = vector.load %arg1[%c0, %c0_0] : memref<16x128xbf16, #tpu.memory_space<vmem>>, vector<16x128xbf16>
    %c0_1 = arith.constant 0 : index
    %c0_2 = arith.constant 0 : index
    %1 = vector.load %arg2[%c0_1, %c0_2] : memref<128x128xbf16, #tpu.memory_space<vmem>>, vector<128x128xbf16>
    %cst = arith.constant dense<0.000000e+00> : vector<16x128xf32>
    %2 = tpu.matmul %0, %1, %cst {dimension_numbers = #tpu.dot_dimension_numbers<[1], [0], [0], [1], [0, 0, 1, 1], [], []>} : vector<16x128xbf16>, vector<128x128xbf16>, vector<16x128xf32> -> vector<16x128xf32>
    %c0_3 = arith.constant 0 : index
    %c0_4 = arith.constant 0 : index
    %3 = vector.load %arg3[%c0_3, %c0_4] : memref<1x128xf32, #tpu.memory_space<vmem>>, vector<1x128xf32>
    %4 = vector.broadcast %3 : vector<1x128xf32> to vector<16x128xf32>
    %5 = arith.addf %2, %4 : vector<16x128xf32>
    %c0_5 = arith.constant 0 : index
    %c0_6 = arith.constant 0 : index
    %6 = vector.load %arg4[%c0_5, %c0_6] : memref<16x128xbf16, #tpu.memory_space<vmem>>, vector<16x128xbf16>
    %7 = arith.extf %6 : vector<16x128xbf16> to vector<16x128xf32>
    %8 = arith.addf %5, %7 : vector<16x128xf32>
    %cst_7 = arith.constant dense<0.000000e+00> : vector<16xf32>
    %9 = vector.multi_reduction <add>, %8, %cst_7 [1] : vector<16x128xf32> to vector<16xf32>
    %10 = vector.shape_cast %9 : vector<16xf32> to vector<16x1xf32>
    %cst_8 = arith.constant 1.280000e+02 : f32
    %11 = vector.broadcast %cst_8 : f32 to vector<16x1xf32>
    %12 = arith.divf %10, %11 : vector<16x1xf32>
    %13 = vector.broadcast %12 : vector<16x1xf32> to vector<16x128xf32>
    %14 = arith.subf %8, %13 : vector<16x128xf32>
    %15 = arith.mulf %14, %14 : vector<16x128xf32>
    %cst_9 = arith.constant dense<0.000000e+00> : vector<16xf32>
    %16 = vector.multi_reduction <add>, %15, %cst_9 [1] : vector<16x128xf32> to vector<16xf32>
    %17 = vector.shape_cast %16 : vector<16xf32> to vector<16x1xf32>
    %cst_10 = arith.constant 1.280000e+02 : f32
    %18 = vector.broadcast %cst_10 : f32 to vector<16x1xf32>
    %19 = arith.divf %17, %18 : vector<16x1xf32>
    %20 = vector.broadcast %12 : vector<16x1xf32> to vector<16x128xf32>
    %21 = arith.subf %8, %20 : vector<16x128xf32>
    %cst_11 = arith.constant 9.99999996E-13 : f32
    %22 = vector.broadcast %cst_11 : f32 to vector<16x1xf32>
    %23 = arith.addf %19, %22 : vector<16x1xf32>
    %24 = math.rsqrt %23 : vector<16x1xf32>
    %25 = vector.broadcast %24 : vector<16x1xf32> to vector<16x128xf32>
    %26 = arith.mulf %21, %25 : vector<16x128xf32>
    %c0_12 = arith.constant 0 : index
    %c0_13 = arith.constant 0 : index
    %27 = vector.load %arg5[%c0_12, %c0_13] : memref<1x128xf32, #tpu.memory_space<vmem>>, vector<1x128xf32>
    %28 = vector.broadcast %27 : vector<1x128xf32> to vector<16x128xf32>
    %29 = arith.mulf %26, %28 : vector<16x128xf32>
    %c0_14 = arith.constant 0 : index
    %c0_15 = arith.constant 0 : index
    %30 = vector.load %arg6[%c0_14, %c0_15] : memref<1x128xf32, #tpu.memory_space<vmem>>, vector<1x128xf32>
    %31 = vector.broadcast %30 : vector<1x128xf32> to vector<16x128xf32>
    %32 = arith.addf %29, %31 : vector<16x128xf32>
    %33 = arith.truncf %32 : vector<16x128xf32> to vector<16x128xbf16>
    %c0_16 = arith.constant 0 : index
    %c0_17 = arith.constant 0 : index
    %34 = vector.load %arg7[%c0_16, %c0_17] : memref<16x128xbf16, #tpu.memory_space<vmem>>, vector<16x128xbf16>
    tpu.vector_store %arg7[%c0_16, %c0_17], %33 {strides = array<i32>} : memref<16x128xbf16, #tpu.memory_space<vmem>>, vector<16x128xbf16>,
    return
  }
  func.func @transform_0(%arg0: i32) -> (i32, i32) {
    %c0_i32 = arith.constant 0 : i32
    %c0_i32_0 = arith.constant 0 : i32
    return %arg0, %c0_i32 : i32, i32
  }
  func.func @transform_1(%arg0: i32) -> (i32, i32) {
    %c0_i32 = arith.constant 0 : i32
    %c0_i32_0 = arith.constant 0 : i32
    %c0_i32_1 = arith.constant 0 : i32
    return %c0_i32, %c0_i32_0 : i32, i32
  }
  func.func @transform_2(%arg0: i32) -> (i32, i32) {
    %c0_i32 = arith.constant 0 : i32
    %c0_i32_0 = arith.constant 0 : i32
    %c0_i32_1 = arith.constant 0 : i32
    return %c0_i32, %c0_i32_0 : i32, i32
  }
  func.func @transform_3(%arg0: i32) -> (i32, i32) {
    %c0_i32 = arith.constant 0 : i32
    %c0_i32_0 = arith.constant 0 : i32
    return %arg0, %c0_i32 : i32, i32
  }
  func.func @transform_4(%arg0: i32) -> (i32, i32) {
    %c0_i32 = arith.constant 0 : i32
    %c0_i32_0 = arith.constant 0 : i32
    %c0_i32_1 = arith.constant 0 : i32
    return %c0_i32, %c0_i32_0 : i32, i32
  }
  func.func @transform_5(%arg0: i32) -> (i32, i32) {
    %c0_i32 = arith.constant 0 : i32
    %c0_i32_0 = arith.constant 0 : i32
    %c0_i32_1 = arith.constant 0 : i32
    return %c0_i32, %c0_i32_0 : i32, i32
  }
  func.func @transform_6(%arg0: i32) -> (i32, i32) {
    %c0_i32 = arith.constant 0 : i32
    %c0_i32_0 = arith.constant 0 : i32
    return %arg0, %c0_i32 : i32, i32
  }
}

module attributes {stable_mosaic.version = 11 : i64} {
  func.func @_attn_qkv_kernel(%arg0: i32, %arg1: memref<1x16x128xbf16, #tpu.memory_space<vmem>>, %arg2: memref<128x384xbf16, #tpu.memory_space<vmem>>, %arg3: memref<1x384xf32, #tpu.memory_space<vmem>>, %arg4: memref<1x1x16xf32, #tpu.memory_space<vmem>>, %arg5: memref<1x16x128xbf16, #tpu.memory_space<vmem>>) attributes {dimension_semantics = [#tpu.dimension_semantics<parallel>], iteration_bounds = array<i64: 2>, scalar_prefetch = 0 : i64, scratch_operands = 0 : i64, tpu.core_type = #tpu.core_type<tc>, window_params = [{transform_indices = @transform_0, window_bounds = array<i64: 1, 16, 128>}, {pipeline_mode = #tpu.pipeline_mode<synchronous>, transform_indices = @transform_1, window_bounds = array<i64: 128, 384>}, {pipeline_mode = #tpu.pipeline_mode<synchronous>, transform_indices = @transform_2, window_bounds = array<i64: 1, 384>}, {transform_indices = @transform_3, window_bounds = array<i64: 1, 1, 16>}, {transform_indices = @transform_4, window_bounds = array<i64: 1, 16, 128>}]} {
    %c0 = arith.constant 0 : index
    %c0_0 = arith.constant 0 : index
    %c0_1 = arith.constant 0 : index
    %0 = vector.load %arg1[%c0, %c0_0, %c0_1] : memref<1x16x128xbf16, #tpu.memory_space<vmem>>, vector<1x16x128xbf16>
    %1 = vector.shape_cast %0 : vector<1x16x128xbf16> to vector<16x128xbf16>
    %c0_2 = arith.constant 0 : index
    %c0_3 = arith.constant 0 : index
    %2 = vector.load %arg2[%c0_2, %c0_3] : memref<128x384xbf16, #tpu.memory_space<vmem>>, vector<128x384xbf16>
    %cst = arith.constant dense<0.000000e+00> : vector<16x384xf32>
    %3 = tpu.matmul %1, %2, %cst {dimension_numbers = #tpu.dot_dimension_numbers<[1], [0], [0], [1], [0, 0, 1, 1], [], []>} : vector<16x128xbf16>, vector<128x384xbf16>, vector<16x384xf32> -> vector<16x384xf32>
    %c0_4 = arith.constant 0 : index
    %c0_5 = arith.constant 0 : index
    %4 = vector.load %arg3[%c0_4, %c0_5] : memref<1x384xf32, #tpu.memory_space<vmem>>, vector<1x384xf32>
    %5 = vector.broadcast %4 : vector<1x384xf32> to vector<16x384xf32>
    %6 = arith.addf %3, %5 : vector<16x384xf32>
    %7 = arith.truncf %6 : vector<16x384xf32> to vector<16x384xbf16>
    %c0_6 = arith.constant 0 : index
    %c0_7 = arith.constant 0 : index
    %c0_8 = arith.constant 0 : index
    %8 = vector.load %arg4[%c0_6, %c0_7, %c0_8] : memref<1x1x16xf32, #tpu.memory_space<vmem>>, vector<1x1x16xf32>
    %9 = vector.shape_cast %8 : vector<1x1x16xf32> to vector<1x16xf32>
    %10 = vector.shape_cast %9 : vector<1x16xf32> to vector<1x16xf32>
    %11 = vector.broadcast %10 : vector<1x16xf32> to vector<16x16xf32>
    %12 = vector.extract_strided_slice %7 {offsets = [0, 0], sizes = [16, 32], strides = [1, 1]} : vector<16x384xbf16> to vector<16x32xbf16>
    %13 = vector.extract_strided_slice %7 {offsets = [0, 128], sizes = [16, 32], strides = [1, 1]} : vector<16x384xbf16> to vector<16x32xbf16>
    %14 = vector.extract_strided_slice %7 {offsets = [0, 256], sizes = [16, 32], strides = [1, 1]} : vector<16x384xbf16> to vector<16x32xbf16>
    %cst_9 = arith.constant dense<0.000000e+00> : vector<16x16xf32>
    %15 = tpu.matmul %12, %13, %cst_9 {dimension_numbers = #tpu.dot_dimension_numbers<[1], [1], [0], [0], [0, 0, 1, 0], [], []>} : vector<16x32xbf16>, vector<16x32xbf16>, vector<16x16xf32> -> vector<16x16xf32>
    %cst_10 = arith.constant 0.176776692 : f32
    %16 = vector.broadcast %cst_10 : f32 to vector<16x16xf32>
    %17 = arith.mulf %15, %16 : vector<16x16xf32>
    %18 = arith.addf %17, %11 : vector<16x16xf32>
    %cst_11 = arith.constant dense<0xFF800000> : vector<16xf32>
    %19 = vector.multi_reduction <maximumf>, %18, %cst_11 [1] : vector<16x16xf32> to vector<16xf32>
    %20 = vector.shape_cast %19 : vector<16xf32> to vector<16x1xf32>
    %21 = vector.broadcast %20 : vector<16x1xf32> to vector<16x16xf32>
    %22 = arith.subf %18, %21 : vector<16x16xf32>
    %23 = math.exp %22 : vector<16x16xf32>
    %cst_12 = arith.constant dense<0.000000e+00> : vector<16xf32>
    %24 = vector.multi_reduction <add>, %23, %cst_12 [1] : vector<16x16xf32> to vector<16xf32>
    %25 = vector.shape_cast %24 : vector<16xf32> to vector<16x1xf32>
    %26 = tpu.reciprocal %25 {approx = true} : vector<16x1xf32> -> vector<16x1xf32>
    %27 = vector.broadcast %26 : vector<16x1xf32> to vector<16x16xf32>
    %28 = arith.mulf %23, %27 : vector<16x16xf32>
    %29 = arith.truncf %28 : vector<16x16xf32> to vector<16x16xbf16>
    %cst_13 = arith.constant dense<0.000000e+00> : vector<16x32xf32>
    %30 = tpu.matmul %29, %14, %cst_13 {dimension_numbers = #tpu.dot_dimension_numbers<[1], [0], [0], [1], [0, 0, 1, 1], [], []>} : vector<16x16xbf16>, vector<16x32xbf16>, vector<16x32xf32> -> vector<16x32xf32>
    %31 = arith.truncf %30 : vector<16x32xf32> to vector<16x32xbf16>
    %c0_14 = arith.constant 0 : index
    %c0_15 = arith.constant 0 : index
    %c0_16 = arith.constant 0 : index
    %32 = vector.load %arg5[%c0_14, %c0_15, %c0_16] : memref<1x16x128xbf16, #tpu.memory_space<vmem>>, vector<1x16x32xbf16>
    %33 = vector.shape_cast %32 : vector<1x16x32xbf16> to vector<16x32xbf16>
    %34 = vector.shape_cast %31 : vector<16x32xbf16> to vector<1x16x32xbf16>
    tpu.vector_store %arg5[%c0_14, %c0_15, %c0_16], %34 {strides = array<i32>} : memref<1x16x128xbf16, #tpu.memory_space<vmem>>, vector<1x16x32xbf16>,
    %35 = vector.extract_strided_slice %7 {offsets = [0, 32], sizes = [16, 32], strides = [1, 1]} : vector<16x384xbf16> to vector<16x32xbf16>
    %36 = vector.extract_strided_slice %7 {offsets = [0, 160], sizes = [16, 32], strides = [1, 1]} : vector<16x384xbf16> to vector<16x32xbf16>
    %37 = vector.extract_strided_slice %7 {offsets = [0, 288], sizes = [16, 32], strides = [1, 1]} : vector<16x384xbf16> to vector<16x32xbf16>
    %cst_17 = arith.constant dense<0.000000e+00> : vector<16x16xf32>
    %38 = tpu.matmul %35, %36, %cst_17 {dimension_numbers = #tpu.dot_dimension_numbers<[1], [1], [0], [0], [0, 0, 1, 0], [], []>} : vector<16x32xbf16>, vector<16x32xbf16>, vector<16x16xf32> -> vector<16x16xf32>
    %cst_18 = arith.constant 0.176776692 : f32
    %39 = vector.broadcast %cst_18 : f32 to vector<16x16xf32>
    %40 = arith.mulf %38, %39 : vector<16x16xf32>
    %41 = arith.addf %40, %11 : vector<16x16xf32>
    %cst_19 = arith.constant dense<0xFF800000> : vector<16xf32>
    %42 = vector.multi_reduction <maximumf>, %41, %cst_19 [1] : vector<16x16xf32> to vector<16xf32>
    %43 = vector.shape_cast %42 : vector<16xf32> to vector<16x1xf32>
    %44 = vector.broadcast %43 : vector<16x1xf32> to vector<16x16xf32>
    %45 = arith.subf %41, %44 : vector<16x16xf32>
    %46 = math.exp %45 : vector<16x16xf32>
    %cst_20 = arith.constant dense<0.000000e+00> : vector<16xf32>
    %47 = vector.multi_reduction <add>, %46, %cst_20 [1] : vector<16x16xf32> to vector<16xf32>
    %48 = vector.shape_cast %47 : vector<16xf32> to vector<16x1xf32>
    %49 = tpu.reciprocal %48 {approx = true} : vector<16x1xf32> -> vector<16x1xf32>
    %50 = vector.broadcast %49 : vector<16x1xf32> to vector<16x16xf32>
    %51 = arith.mulf %46, %50 : vector<16x16xf32>
    %52 = arith.truncf %51 : vector<16x16xf32> to vector<16x16xbf16>
    %cst_21 = arith.constant dense<0.000000e+00> : vector<16x32xf32>
    %53 = tpu.matmul %52, %37, %cst_21 {dimension_numbers = #tpu.dot_dimension_numbers<[1], [0], [0], [1], [0, 0, 1, 1], [], []>} : vector<16x16xbf16>, vector<16x32xbf16>, vector<16x32xf32> -> vector<16x32xf32>
    %54 = arith.truncf %53 : vector<16x32xf32> to vector<16x32xbf16>
    %c0_22 = arith.constant 0 : index
    %c0_23 = arith.constant 0 : index
    %c32 = arith.constant 32 : index
    %55 = vector.load %arg5[%c0_22, %c0_23, %c32] : memref<1x16x128xbf16, #tpu.memory_space<vmem>>, vector<1x16x32xbf16>
    %56 = vector.shape_cast %55 : vector<1x16x32xbf16> to vector<16x32xbf16>
    %57 = vector.shape_cast %54 : vector<16x32xbf16> to vector<1x16x32xbf16>
    tpu.vector_store %arg5[%c0_22, %c0_23, %c32], %57 {strides = array<i32>} : memref<1x16x128xbf16, #tpu.memory_space<vmem>>, vector<1x16x32xbf16>,
    %58 = vector.extract_strided_slice %7 {offsets = [0, 64], sizes = [16, 32], strides = [1, 1]} : vector<16x384xbf16> to vector<16x32xbf16>
    %59 = vector.extract_strided_slice %7 {offsets = [0, 192], sizes = [16, 32], strides = [1, 1]} : vector<16x384xbf16> to vector<16x32xbf16>
    %60 = vector.extract_strided_slice %7 {offsets = [0, 320], sizes = [16, 32], strides = [1, 1]} : vector<16x384xbf16> to vector<16x32xbf16>
    %cst_24 = arith.constant dense<0.000000e+00> : vector<16x16xf32>
    %61 = tpu.matmul %58, %59, %cst_24 {dimension_numbers = #tpu.dot_dimension_numbers<[1], [1], [0], [0], [0, 0, 1, 0], [], []>} : vector<16x32xbf16>, vector<16x32xbf16>, vector<16x16xf32> -> vector<16x16xf32>
    %cst_25 = arith.constant 0.176776692 : f32
    %62 = vector.broadcast %cst_25 : f32 to vector<16x16xf32>
    %63 = arith.mulf %61, %62 : vector<16x16xf32>
    %64 = arith.addf %63, %11 : vector<16x16xf32>
    %cst_26 = arith.constant dense<0xFF800000> : vector<16xf32>
    %65 = vector.multi_reduction <maximumf>, %64, %cst_26 [1] : vector<16x16xf32> to vector<16xf32>
    %66 = vector.shape_cast %65 : vector<16xf32> to vector<16x1xf32>
    %67 = vector.broadcast %66 : vector<16x1xf32> to vector<16x16xf32>
    %68 = arith.subf %64, %67 : vector<16x16xf32>
    %69 = math.exp %68 : vector<16x16xf32>
    %cst_27 = arith.constant dense<0.000000e+00> : vector<16xf32>
    %70 = vector.multi_reduction <add>, %69, %cst_27 [1] : vector<16x16xf32> to vector<16xf32>
    %71 = vector.shape_cast %70 : vector<16xf32> to vector<16x1xf32>
    %72 = tpu.reciprocal %71 {approx = true} : vector<16x1xf32> -> vector<16x1xf32>
    %73 = vector.broadcast %72 : vector<16x1xf32> to vector<16x16xf32>
    %74 = arith.mulf %69, %73 : vector<16x16xf32>
    %75 = arith.truncf %74 : vector<16x16xf32> to vector<16x16xbf16>
    %cst_28 = arith.constant dense<0.000000e+00> : vector<16x32xf32>
    %76 = tpu.matmul %75, %60, %cst_28 {dimension_numbers = #tpu.dot_dimension_numbers<[1], [0], [0], [1], [0, 0, 1, 1], [], []>} : vector<16x16xbf16>, vector<16x32xbf16>, vector<16x32xf32> -> vector<16x32xf32>
    %77 = arith.truncf %76 : vector<16x32xf32> to vector<16x32xbf16>
    %c0_29 = arith.constant 0 : index
    %c0_30 = arith.constant 0 : index
    %c64 = arith.constant 64 : index
    %78 = vector.load %arg5[%c0_29, %c0_30, %c64] : memref<1x16x128xbf16, #tpu.memory_space<vmem>>, vector<1x16x32xbf16>
    %79 = vector.shape_cast %78 : vector<1x16x32xbf16> to vector<16x32xbf16>
    %80 = vector.shape_cast %77 : vector<16x32xbf16> to vector<1x16x32xbf16>
    tpu.vector_store %arg5[%c0_29, %c0_30, %c64], %80 {strides = array<i32>} : memref<1x16x128xbf16, #tpu.memory_space<vmem>>, vector<1x16x32xbf16>,
    %81 = vector.extract_strided_slice %7 {offsets = [0, 96], sizes = [16, 32], strides = [1, 1]} : vector<16x384xbf16> to vector<16x32xbf16>
    %82 = vector.extract_strided_slice %7 {offsets = [0, 224], sizes = [16, 32], strides = [1, 1]} : vector<16x384xbf16> to vector<16x32xbf16>
    %83 = vector.extract_strided_slice %7 {offsets = [0, 352], sizes = [16, 32], strides = [1, 1]} : vector<16x384xbf16> to vector<16x32xbf16>
    %cst_31 = arith.constant dense<0.000000e+00> : vector<16x16xf32>
    %84 = tpu.matmul %81, %82, %cst_31 {dimension_numbers = #tpu.dot_dimension_numbers<[1], [1], [0], [0], [0, 0, 1, 0], [], []>} : vector<16x32xbf16>, vector<16x32xbf16>, vector<16x16xf32> -> vector<16x16xf32>
    %cst_32 = arith.constant 0.176776692 : f32
    %85 = vector.broadcast %cst_32 : f32 to vector<16x16xf32>
    %86 = arith.mulf %84, %85 : vector<16x16xf32>
    %87 = arith.addf %86, %11 : vector<16x16xf32>
    %cst_33 = arith.constant dense<0xFF800000> : vector<16xf32>
    %88 = vector.multi_reduction <maximumf>, %87, %cst_33 [1] : vector<16x16xf32> to vector<16xf32>
    %89 = vector.shape_cast %88 : vector<16xf32> to vector<16x1xf32>
    %90 = vector.broadcast %89 : vector<16x1xf32> to vector<16x16xf32>
    %91 = arith.subf %87, %90 : vector<16x16xf32>
    %92 = math.exp %91 : vector<16x16xf32>
    %cst_34 = arith.constant dense<0.000000e+00> : vector<16xf32>
    %93 = vector.multi_reduction <add>, %92, %cst_34 [1] : vector<16x16xf32> to vector<16xf32>
    %94 = vector.shape_cast %93 : vector<16xf32> to vector<16x1xf32>
    %95 = tpu.reciprocal %94 {approx = true} : vector<16x1xf32> -> vector<16x1xf32>
    %96 = vector.broadcast %95 : vector<16x1xf32> to vector<16x16xf32>
    %97 = arith.mulf %92, %96 : vector<16x16xf32>
    %98 = arith.truncf %97 : vector<16x16xf32> to vector<16x16xbf16>
    %cst_35 = arith.constant dense<0.000000e+00> : vector<16x32xf32>
    %99 = tpu.matmul %98, %83, %cst_35 {dimension_numbers = #tpu.dot_dimension_numbers<[1], [0], [0], [1], [0, 0, 1, 1], [], []>} : vector<16x16xbf16>, vector<16x32xbf16>, vector<16x32xf32> -> vector<16x32xf32>
    %100 = arith.truncf %99 : vector<16x32xf32> to vector<16x32xbf16>
    %c0_36 = arith.constant 0 : index
    %c0_37 = arith.constant 0 : index
    %c96 = arith.constant 96 : index
    %101 = vector.load %arg5[%c0_36, %c0_37, %c96] : memref<1x16x128xbf16, #tpu.memory_space<vmem>>, vector<1x16x32xbf16>
    %102 = vector.shape_cast %101 : vector<1x16x32xbf16> to vector<16x32xbf16>
    %103 = vector.shape_cast %100 : vector<16x32xbf16> to vector<1x16x32xbf16>
    tpu.vector_store %arg5[%c0_36, %c0_37, %c96], %103 {strides = array<i32>} : memref<1x16x128xbf16, #tpu.memory_space<vmem>>, vector<1x16x32xbf16>,
    return
  }
  func.func @transform_0(%arg0: i32) -> (i32, i32, i32) {
    %c0_i32 = arith.constant 0 : i32
    %c0_i32_0 = arith.constant 0 : i32
    %c0_i32_1 = arith.constant 0 : i32
    return %arg0, %c0_i32, %c0_i32_0 : i32, i32, i32
  }
  func.func @transform_1(%arg0: i32) -> (i32, i32) {
    %c0_i32 = arith.constant 0 : i32
    %c0_i32_0 = arith.constant 0 : i32
    %c0_i32_1 = arith.constant 0 : i32
    return %c0_i32, %c0_i32_0 : i32, i32
  }
  func.func @transform_2(%arg0: i32) -> (i32, i32) {
    %c0_i32 = arith.constant 0 : i32
    %c0_i32_0 = arith.constant 0 : i32
    %c0_i32_1 = arith.constant 0 : i32
    return %c0_i32, %c0_i32_0 : i32, i32
  }
  func.func @transform_3(%arg0: i32) -> (i32, i32, i32) {
    %c0_i32 = arith.constant 0 : i32
    %c0_i32_0 = arith.constant 0 : i32
    %c0_i32_1 = arith.constant 0 : i32
    return %arg0, %c0_i32, %c0_i32_0 : i32, i32, i32
  }
  func.func @transform_4(%arg0: i32) -> (i32, i32, i32) {
    %c0_i32 = arith.constant 0 : i32
    %c0_i32_0 = arith.constant 0 : i32
    %c0_i32_1 = arith.constant 0 : i32
    return %arg0, %c0_i32, %c0_i32_0 : i32, i32, i32
  }
}

module attributes {stable_mosaic.version = 11 : i64} {
  func.func @_add_ln_kernel(%arg0: i32, %arg1: memref<16x128xf32, #tpu.memory_space<vmem>>, %arg2: memref<16x128xf32, #tpu.memory_space<vmem>>, %arg3: memref<1x128xf32, #tpu.memory_space<vmem>>, %arg4: memref<1x128xf32, #tpu.memory_space<vmem>>, %arg5: memref<16x128xbf16, #tpu.memory_space<vmem>>) attributes {dimension_semantics = [#tpu.dimension_semantics<parallel>], iteration_bounds = array<i64: 2>, scalar_prefetch = 0 : i64, scratch_operands = 0 : i64, tpu.core_type = #tpu.core_type<tc>, window_params = [{transform_indices = @transform_0, window_bounds = array<i64: 16, 128>}, {transform_indices = @transform_1, window_bounds = array<i64: 16, 128>}, {pipeline_mode = #tpu.pipeline_mode<synchronous>, transform_indices = @transform_2, window_bounds = array<i64: 1, 128>}, {pipeline_mode = #tpu.pipeline_mode<synchronous>, transform_indices = @transform_3, window_bounds = array<i64: 1, 128>}, {transform_indices = @transform_4, window_bounds = array<i64: 16, 128>}]} {
    %c0 = arith.constant 0 : index
    %c0_0 = arith.constant 0 : index
    %0 = vector.load %arg1[%c0, %c0_0] : memref<16x128xf32, #tpu.memory_space<vmem>>, vector<16x128xf32>
    %c0_1 = arith.constant 0 : index
    %c0_2 = arith.constant 0 : index
    %1 = vector.load %arg2[%c0_1, %c0_2] : memref<16x128xf32, #tpu.memory_space<vmem>>, vector<16x128xf32>
    %2 = arith.addf %0, %1 : vector<16x128xf32>
    %cst = arith.constant dense<0.000000e+00> : vector<16xf32>
    %3 = vector.multi_reduction <add>, %2, %cst [1] : vector<16x128xf32> to vector<16xf32>
    %4 = vector.shape_cast %3 : vector<16xf32> to vector<16x1xf32>
    %cst_3 = arith.constant 1.280000e+02 : f32
    %5 = vector.broadcast %cst_3 : f32 to vector<16x1xf32>
    %6 = arith.divf %4, %5 : vector<16x1xf32>
    %7 = vector.broadcast %6 : vector<16x1xf32> to vector<16x128xf32>
    %8 = arith.subf %2, %7 : vector<16x128xf32>
    %9 = arith.mulf %8, %8 : vector<16x128xf32>
    %cst_4 = arith.constant dense<0.000000e+00> : vector<16xf32>
    %10 = vector.multi_reduction <add>, %9, %cst_4 [1] : vector<16x128xf32> to vector<16xf32>
    %11 = vector.shape_cast %10 : vector<16xf32> to vector<16x1xf32>
    %cst_5 = arith.constant 1.280000e+02 : f32
    %12 = vector.broadcast %cst_5 : f32 to vector<16x1xf32>
    %13 = arith.divf %11, %12 : vector<16x1xf32>
    %14 = vector.broadcast %6 : vector<16x1xf32> to vector<16x128xf32>
    %15 = arith.subf %2, %14 : vector<16x128xf32>
    %cst_6 = arith.constant 9.99999996E-13 : f32
    %16 = vector.broadcast %cst_6 : f32 to vector<16x1xf32>
    %17 = arith.addf %13, %16 : vector<16x1xf32>
    %18 = math.rsqrt %17 : vector<16x1xf32>
    %19 = vector.broadcast %18 : vector<16x1xf32> to vector<16x128xf32>
    %20 = arith.mulf %15, %19 : vector<16x128xf32>
    %c0_7 = arith.constant 0 : index
    %c0_8 = arith.constant 0 : index
    %21 = vector.load %arg3[%c0_7, %c0_8] : memref<1x128xf32, #tpu.memory_space<vmem>>, vector<1x128xf32>
    %22 = vector.broadcast %21 : vector<1x128xf32> to vector<16x128xf32>
    %23 = arith.mulf %20, %22 : vector<16x128xf32>
    %c0_9 = arith.constant 0 : index
    %c0_10 = arith.constant 0 : index
    %24 = vector.load %arg4[%c0_9, %c0_10] : memref<1x128xf32, #tpu.memory_space<vmem>>, vector<1x128xf32>
    %25 = vector.broadcast %24 : vector<1x128xf32> to vector<16x128xf32>
    %26 = arith.addf %23, %25 : vector<16x128xf32>
    %27 = arith.truncf %26 : vector<16x128xf32> to vector<16x128xbf16>
    %c0_11 = arith.constant 0 : index
    %c0_12 = arith.constant 0 : index
    %28 = vector.load %arg5[%c0_11, %c0_12] : memref<16x128xbf16, #tpu.memory_space<vmem>>, vector<16x128xbf16>
    tpu.vector_store %arg5[%c0_11, %c0_12], %27 {strides = array<i32>} : memref<16x128xbf16, #tpu.memory_space<vmem>>, vector<16x128xbf16>,
    return
  }
  func.func @transform_0(%arg0: i32) -> (i32, i32) {
    %c0_i32 = arith.constant 0 : i32
    %c0_i32_0 = arith.constant 0 : i32
    return %arg0, %c0_i32 : i32, i32
  }
  func.func @transform_1(%arg0: i32) -> (i32, i32) {
    %c0_i32 = arith.constant 0 : i32
    %c0_i32_0 = arith.constant 0 : i32
    return %arg0, %c0_i32 : i32, i32
  }
  func.func @transform_2(%arg0: i32) -> (i32, i32) {
    %c0_i32 = arith.constant 0 : i32
    %c0_i32_0 = arith.constant 0 : i32
    %c0_i32_1 = arith.constant 0 : i32
    return %c0_i32, %c0_i32_0 : i32, i32
  }
  func.func @transform_3(%arg0: i32) -> (i32, i32) {
    %c0_i32 = arith.constant 0 : i32
    %c0_i32_0 = arith.constant 0 : i32
    %c0_i32_1 = arith.constant 0 : i32
    return %c0_i32, %c0_i32_0 : i32, i32
  }
  func.func @transform_4(%arg0: i32) -> (i32, i32) {
    %c0_i32 = arith.constant 0 : i32
    %c0_i32_0 = arith.constant 0 : i32
    return %arg0, %c0_i32 : i32, i32
  }
}

module attributes {stable_mosaic.version = 11 : i64} {
  func.func @_ffn_kernel(%arg0: i32, %arg1: memref<16x128xbf16, #tpu.memory_space<vmem>>, %arg2: memref<128x256xbf16, #tpu.memory_space<vmem>>, %arg3: memref<1x256xf32, #tpu.memory_space<vmem>>, %arg4: memref<256x128xbf16, #tpu.memory_space<vmem>>, %arg5: memref<1x128xf32, #tpu.memory_space<vmem>>, %arg6: memref<1x128xf32, #tpu.memory_space<vmem>>, %arg7: memref<1x128xf32, #tpu.memory_space<vmem>>, %arg8: memref<16x128xbf16, #tpu.memory_space<vmem>>) attributes {dimension_semantics = [#tpu.dimension_semantics<parallel>], iteration_bounds = array<i64: 2>, scalar_prefetch = 0 : i64, scratch_operands = 0 : i64, tpu.core_type = #tpu.core_type<tc>, window_params = [{transform_indices = @transform_0, window_bounds = array<i64: 16, 128>}, {pipeline_mode = #tpu.pipeline_mode<synchronous>, transform_indices = @transform_1, window_bounds = array<i64: 128, 256>}, {pipeline_mode = #tpu.pipeline_mode<synchronous>, transform_indices = @transform_2, window_bounds = array<i64: 1, 256>}, {pipeline_mode = #tpu.pipeline_mode<synchronous>, transform_indices = @transform_3, window_bounds = array<i64: 256, 128>}, {pipeline_mode = #tpu.pipeline_mode<synchronous>, transform_indices = @transform_4, window_bounds = array<i64: 1, 128>}, {pipeline_mode = #tpu.pipeline_mode<synchronous>, transform_indices = @transform_5, window_bounds = array<i64: 1, 128>}, {pipeline_mode = #tpu.pipeline_mode<synchronous>, transform_indices = @transform_6, window_bounds = array<i64: 1, 128>}, {transform_indices = @transform_7, window_bounds = array<i64: 16, 128>}]} {
    %c0 = arith.constant 0 : index
    %c0_0 = arith.constant 0 : index
    %0 = vector.load %arg1[%c0, %c0_0] : memref<16x128xbf16, #tpu.memory_space<vmem>>, vector<16x128xbf16>
    %c0_1 = arith.constant 0 : index
    %c0_2 = arith.constant 0 : index
    %1 = vector.load %arg2[%c0_1, %c0_2] : memref<128x256xbf16, #tpu.memory_space<vmem>>, vector<128x256xbf16>
    %cst = arith.constant dense<0.000000e+00> : vector<16x256xf32>
    %2 = tpu.matmul %0, %1, %cst {dimension_numbers = #tpu.dot_dimension_numbers<[1], [0], [0], [1], [0, 0, 1, 1], [], []>} : vector<16x128xbf16>, vector<128x256xbf16>, vector<16x256xf32> -> vector<16x256xf32>
    %c0_3 = arith.constant 0 : index
    %c0_4 = arith.constant 0 : index
    %3 = vector.load %arg3[%c0_3, %c0_4] : memref<1x256xf32, #tpu.memory_space<vmem>>, vector<1x256xf32>
    %4 = vector.broadcast %3 : vector<1x256xf32> to vector<16x256xf32>
    %5 = arith.addf %2, %4 : vector<16x256xf32>
    %6 = arith.mulf %5, %5 : vector<16x256xf32>
    %7 = arith.mulf %5, %6 : vector<16x256xf32>
    %cst_5 = arith.constant 4.471500e-02 : f32
    %8 = vector.broadcast %cst_5 : f32 to vector<16x256xf32>
    %9 = arith.mulf %8, %7 : vector<16x256xf32>
    %10 = arith.addf %5, %9 : vector<16x256xf32>
    %cst_6 = arith.constant 0.797884583 : f32
    %11 = vector.broadcast %cst_6 : f32 to vector<16x256xf32>
    %12 = arith.mulf %11, %10 : vector<16x256xf32>
    %13 = math.tanh %12 : vector<16x256xf32>
    %cst_7 = arith.constant 1.000000e+00 : f32
    %14 = vector.broadcast %cst_7 : f32 to vector<16x256xf32>
    %15 = arith.addf %14, %13 : vector<16x256xf32>
    %cst_8 = arith.constant 5.000000e-01 : f32
    %16 = vector.broadcast %cst_8 : f32 to vector<16x256xf32>
    %17 = arith.mulf %16, %15 : vector<16x256xf32>
    %18 = arith.mulf %5, %17 : vector<16x256xf32>
    %19 = arith.truncf %18 : vector<16x256xf32> to vector<16x256xbf16>
    %c0_9 = arith.constant 0 : index
    %c0_10 = arith.constant 0 : index
    %20 = vector.load %arg4[%c0_9, %c0_10] : memref<256x128xbf16, #tpu.memory_space<vmem>>, vector<256x128xbf16>
    %cst_11 = arith.constant dense<0.000000e+00> : vector<16x128xf32>
    %21 = tpu.matmul %19, %20, %cst_11 {dimension_numbers = #tpu.dot_dimension_numbers<[1], [0], [0], [1], [0, 0, 1, 1], [], []>} : vector<16x256xbf16>, vector<256x128xbf16>, vector<16x128xf32> -> vector<16x128xf32>
    %c0_12 = arith.constant 0 : index
    %c0_13 = arith.constant 0 : index
    %22 = vector.load %arg5[%c0_12, %c0_13] : memref<1x128xf32, #tpu.memory_space<vmem>>, vector<1x128xf32>
    %23 = vector.broadcast %22 : vector<1x128xf32> to vector<16x128xf32>
    %24 = arith.addf %21, %23 : vector<16x128xf32>
    %25 = arith.extf %0 : vector<16x128xbf16> to vector<16x128xf32>
    %26 = arith.addf %24, %25 : vector<16x128xf32>
    %cst_14 = arith.constant dense<0.000000e+00> : vector<16xf32>
    %27 = vector.multi_reduction <add>, %26, %cst_14 [1] : vector<16x128xf32> to vector<16xf32>
    %28 = vector.shape_cast %27 : vector<16xf32> to vector<16x1xf32>
    %cst_15 = arith.constant 1.280000e+02 : f32
    %29 = vector.broadcast %cst_15 : f32 to vector<16x1xf32>
    %30 = arith.divf %28, %29 : vector<16x1xf32>
    %31 = vector.broadcast %30 : vector<16x1xf32> to vector<16x128xf32>
    %32 = arith.subf %26, %31 : vector<16x128xf32>
    %33 = arith.mulf %32, %32 : vector<16x128xf32>
    %cst_16 = arith.constant dense<0.000000e+00> : vector<16xf32>
    %34 = vector.multi_reduction <add>, %33, %cst_16 [1] : vector<16x128xf32> to vector<16xf32>
    %35 = vector.shape_cast %34 : vector<16xf32> to vector<16x1xf32>
    %cst_17 = arith.constant 1.280000e+02 : f32
    %36 = vector.broadcast %cst_17 : f32 to vector<16x1xf32>
    %37 = arith.divf %35, %36 : vector<16x1xf32>
    %38 = vector.broadcast %30 : vector<16x1xf32> to vector<16x128xf32>
    %39 = arith.subf %26, %38 : vector<16x128xf32>
    %cst_18 = arith.constant 9.99999996E-13 : f32
    %40 = vector.broadcast %cst_18 : f32 to vector<16x1xf32>
    %41 = arith.addf %37, %40 : vector<16x1xf32>
    %42 = math.rsqrt %41 : vector<16x1xf32>
    %43 = vector.broadcast %42 : vector<16x1xf32> to vector<16x128xf32>
    %44 = arith.mulf %39, %43 : vector<16x128xf32>
    %c0_19 = arith.constant 0 : index
    %c0_20 = arith.constant 0 : index
    %45 = vector.load %arg6[%c0_19, %c0_20] : memref<1x128xf32, #tpu.memory_space<vmem>>, vector<1x128xf32>
    %46 = vector.broadcast %45 : vector<1x128xf32> to vector<16x128xf32>
    %47 = arith.mulf %44, %46 : vector<16x128xf32>
    %c0_21 = arith.constant 0 : index
    %c0_22 = arith.constant 0 : index
    %48 = vector.load %arg7[%c0_21, %c0_22] : memref<1x128xf32, #tpu.memory_space<vmem>>, vector<1x128xf32>
    %49 = vector.broadcast %48 : vector<1x128xf32> to vector<16x128xf32>
    %50 = arith.addf %47, %49 : vector<16x128xf32>
    %51 = arith.truncf %50 : vector<16x128xf32> to vector<16x128xbf16>
    %c0_23 = arith.constant 0 : index
    %c0_24 = arith.constant 0 : index
    %52 = vector.load %arg8[%c0_23, %c0_24] : memref<16x128xbf16, #tpu.memory_space<vmem>>, vector<16x128xbf16>
    tpu.vector_store %arg8[%c0_23, %c0_24], %51 {strides = array<i32>} : memref<16x128xbf16, #tpu.memory_space<vmem>>, vector<16x128xbf16>,
    return
  }
  func.func @transform_0(%arg0: i32) -> (i32, i32) {
    %c0_i32 = arith.constant 0 : i32
    %c0_i32_0 = arith.constant 0 : i32
    return %arg0, %c0_i32 : i32, i32
  }
  func.func @transform_1(%arg0: i32) -> (i32, i32) {
    %c0_i32 = arith.constant 0 : i32
    %c0_i32_0 = arith.constant 0 : i32
    %c0_i32_1 = arith.constant 0 : i32
    return %c0_i32, %c0_i32_0 : i32, i32
  }
  func.func @transform_2(%arg0: i32) -> (i32, i32) {
    %c0_i32 = arith.constant 0 : i32
    %c0_i32_0 = arith.constant 0 : i32
    %c0_i32_1 = arith.constant 0 : i32
    return %c0_i32, %c0_i32_0 : i32, i32
  }
  func.func @transform_3(%arg0: i32) -> (i32, i32) {
    %c0_i32 = arith.constant 0 : i32
    %c0_i32_0 = arith.constant 0 : i32
    %c0_i32_1 = arith.constant 0 : i32
    return %c0_i32, %c0_i32_0 : i32, i32
  }
  func.func @transform_4(%arg0: i32) -> (i32, i32) {
    %c0_i32 = arith.constant 0 : i32
    %c0_i32_0 = arith.constant 0 : i32
    %c0_i32_1 = arith.constant 0 : i32
    return %c0_i32, %c0_i32_0 : i32, i32
  }
  func.func @transform_5(%arg0: i32) -> (i32, i32) {
    %c0_i32 = arith.constant 0 : i32
    %c0_i32_0 = arith.constant 0 : i32
    %c0_i32_1 = arith.constant 0 : i32
    return %c0_i32, %c0_i32_0 : i32, i32
  }
  func.func @transform_6(%arg0: i32) -> (i32, i32) {
    %c0_i32 = arith.constant 0 : i32
    %c0_i32_0 = arith.constant 0 : i32
    %c0_i32_1 = arith.constant 0 : i32
    return %c0_i32, %c0_i32_0 : i32, i32
  }
  func.func @transform_7(%arg0: i32) -> (i32, i32) {
    %c0_i32 = arith.constant 0 : i32
    %c0_i32_0 = arith.constant 0 : i32
    return %arg0, %c0_i32 : i32, i32
  }
}

module attributes {stable_mosaic.version = 11 : i64} {
  func.func @_fused_linear_kernel(%arg0: i32, %arg1: memref<16x128xbf16, #tpu.memory_space<vmem>>, %arg2: memref<128x128xbf16, #tpu.memory_space<vmem>>, %arg3: memref<1x128xf32, #tpu.memory_space<vmem>>, %arg4: memref<1x128xf32, #tpu.memory_space<vmem>>, %arg5: memref<1x128xf32, #tpu.memory_space<vmem>>, %arg6: memref<16x128xbf16, #tpu.memory_space<vmem>>) attributes {dimension_semantics = [#tpu.dimension_semantics<parallel>], iteration_bounds = array<i64: 2>, scalar_prefetch = 0 : i64, scratch_operands = 0 : i64, tpu.core_type = #tpu.core_type<tc>, window_params = [{transform_indices = @transform_0, window_bounds = array<i64: 16, 128>}, {pipeline_mode = #tpu.pipeline_mode<synchronous>, transform_indices = @transform_1, window_bounds = array<i64: 128, 128>}, {pipeline_mode = #tpu.pipeline_mode<synchronous>, transform_indices = @transform_2, window_bounds = array<i64: 1, 128>}, {pipeline_mode = #tpu.pipeline_mode<synchronous>, transform_indices = @transform_3, window_bounds = array<i64: 1, 128>}, {pipeline_mode = #tpu.pipeline_mode<synchronous>, transform_indices = @transform_4, window_bounds = array<i64: 1, 128>}, {transform_indices = @transform_5, window_bounds = array<i64: 16, 128>}]} {
    %c0 = arith.constant 0 : index
    %c0_0 = arith.constant 0 : index
    %0 = vector.load %arg1[%c0, %c0_0] : memref<16x128xbf16, #tpu.memory_space<vmem>>, vector<16x128xbf16>
    %c0_1 = arith.constant 0 : index
    %c0_2 = arith.constant 0 : index
    %1 = vector.load %arg2[%c0_1, %c0_2] : memref<128x128xbf16, #tpu.memory_space<vmem>>, vector<128x128xbf16>
    %cst = arith.constant dense<0.000000e+00> : vector<16x128xf32>
    %2 = tpu.matmul %0, %1, %cst {dimension_numbers = #tpu.dot_dimension_numbers<[1], [0], [0], [1], [0, 0, 1, 1], [], []>} : vector<16x128xbf16>, vector<128x128xbf16>, vector<16x128xf32> -> vector<16x128xf32>
    %c0_3 = arith.constant 0 : index
    %c0_4 = arith.constant 0 : index
    %3 = vector.load %arg3[%c0_3, %c0_4] : memref<1x128xf32, #tpu.memory_space<vmem>>, vector<1x128xf32>
    %4 = vector.broadcast %3 : vector<1x128xf32> to vector<16x128xf32>
    %5 = arith.addf %2, %4 : vector<16x128xf32>
    %6 = arith.mulf %5, %5 : vector<16x128xf32>
    %7 = arith.mulf %5, %6 : vector<16x128xf32>
    %cst_5 = arith.constant 4.471500e-02 : f32
    %8 = vector.broadcast %cst_5 : f32 to vector<16x128xf32>
    %9 = arith.mulf %8, %7 : vector<16x128xf32>
    %10 = arith.addf %5, %9 : vector<16x128xf32>
    %cst_6 = arith.constant 0.797884583 : f32
    %11 = vector.broadcast %cst_6 : f32 to vector<16x128xf32>
    %12 = arith.mulf %11, %10 : vector<16x128xf32>
    %13 = math.tanh %12 : vector<16x128xf32>
    %cst_7 = arith.constant 1.000000e+00 : f32
    %14 = vector.broadcast %cst_7 : f32 to vector<16x128xf32>
    %15 = arith.addf %14, %13 : vector<16x128xf32>
    %cst_8 = arith.constant 5.000000e-01 : f32
    %16 = vector.broadcast %cst_8 : f32 to vector<16x128xf32>
    %17 = arith.mulf %16, %15 : vector<16x128xf32>
    %18 = arith.mulf %5, %17 : vector<16x128xf32>
    %cst_9 = arith.constant dense<0.000000e+00> : vector<16xf32>
    %19 = vector.multi_reduction <add>, %18, %cst_9 [1] : vector<16x128xf32> to vector<16xf32>
    %20 = vector.shape_cast %19 : vector<16xf32> to vector<16x1xf32>
    %cst_10 = arith.constant 1.280000e+02 : f32
    %21 = vector.broadcast %cst_10 : f32 to vector<16x1xf32>
    %22 = arith.divf %20, %21 : vector<16x1xf32>
    %23 = vector.broadcast %22 : vector<16x1xf32> to vector<16x128xf32>
    %24 = arith.subf %18, %23 : vector<16x128xf32>
    %25 = arith.mulf %24, %24 : vector<16x128xf32>
    %cst_11 = arith.constant dense<0.000000e+00> : vector<16xf32>
    %26 = vector.multi_reduction <add>, %25, %cst_11 [1] : vector<16x128xf32> to vector<16xf32>
    %27 = vector.shape_cast %26 : vector<16xf32> to vector<16x1xf32>
    %cst_12 = arith.constant 1.280000e+02 : f32
    %28 = vector.broadcast %cst_12 : f32 to vector<16x1xf32>
    %29 = arith.divf %27, %28 : vector<16x1xf32>
    %30 = vector.broadcast %22 : vector<16x1xf32> to vector<16x128xf32>
    %31 = arith.subf %18, %30 : vector<16x128xf32>
    %cst_13 = arith.constant 9.99999996E-13 : f32
    %32 = vector.broadcast %cst_13 : f32 to vector<16x1xf32>
    %33 = arith.addf %29, %32 : vector<16x1xf32>
    %34 = math.rsqrt %33 : vector<16x1xf32>
    %35 = vector.broadcast %34 : vector<16x1xf32> to vector<16x128xf32>
    %36 = arith.mulf %31, %35 : vector<16x128xf32>
    %c0_14 = arith.constant 0 : index
    %c0_15 = arith.constant 0 : index
    %37 = vector.load %arg4[%c0_14, %c0_15] : memref<1x128xf32, #tpu.memory_space<vmem>>, vector<1x128xf32>
    %38 = vector.broadcast %37 : vector<1x128xf32> to vector<16x128xf32>
    %39 = arith.mulf %36, %38 : vector<16x128xf32>
    %c0_16 = arith.constant 0 : index
    %c0_17 = arith.constant 0 : index
    %40 = vector.load %arg5[%c0_16, %c0_17] : memref<1x128xf32, #tpu.memory_space<vmem>>, vector<1x128xf32>
    %41 = vector.broadcast %40 : vector<1x128xf32> to vector<16x128xf32>
    %42 = arith.addf %39, %41 : vector<16x128xf32>
    %43 = arith.truncf %42 : vector<16x128xf32> to vector<16x128xbf16>
    %c0_18 = arith.constant 0 : index
    %c0_19 = arith.constant 0 : index
    %44 = vector.load %arg6[%c0_18, %c0_19] : memref<16x128xbf16, #tpu.memory_space<vmem>>, vector<16x128xbf16>
    tpu.vector_store %arg6[%c0_18, %c0_19], %43 {strides = array<i32>} : memref<16x128xbf16, #tpu.memory_space<vmem>>, vector<16x128xbf16>,
    return
  }
  func.func @transform_0(%arg0: i32) -> (i32, i32) {
    %c0_i32 = arith.constant 0 : i32
    %c0_i32_0 = arith.constant 0 : i32
    return %arg0, %c0_i32 : i32, i32
  }
  func.func @transform_1(%arg0: i32) -> (i32, i32) {
    %c0_i32 = arith.constant 0 : i32
    %c0_i32_0 = arith.constant 0 : i32
    %c0_i32_1 = arith.constant 0 : i32
    return %c0_i32, %c0_i32_0 : i32, i32
  }
  func.func @transform_2(%arg0: i32) -> (i32, i32) {
    %c0_i32 = arith.constant 0 : i32
    %c0_i32_0 = arith.constant 0 : i32
    %c0_i32_1 = arith.constant 0 : i32
    return %c0_i32, %c0_i32_0 : i32, i32
  }
  func.func @transform_3(%arg0: i32) -> (i32, i32) {
    %c0_i32 = arith.constant 0 : i32
    %c0_i32_0 = arith.constant 0 : i32
    %c0_i32_1 = arith.constant 0 : i32
    return %c0_i32, %c0_i32_0 : i32, i32
  }
  func.func @transform_4(%arg0: i32) -> (i32, i32) {
    %c0_i32 = arith.constant 0 : i32
    %c0_i32_0 = arith.constant 0 : i32
    %c0_i32_1 = arith.constant 0 : i32
    return %c0_i32, %c0_i32_0 : i32, i32
  }
  func.func @transform_5(%arg0: i32) -> (i32, i32) {
    %c0_i32 = arith.constant 0 : i32
    %c0_i32_0 = arith.constant 0 : i32
    return %arg0, %c0_i32 : i32, i32
  }
}

module attributes {stable_mosaic.version = 11 : i64} {
  func.func @_fused_linear_kernel(%arg0: i32, %arg1: memref<16x128xbf16, #tpu.memory_space<vmem>>, %arg2: memref<128x128xbf16, #tpu.memory_space<vmem>>, %arg3: memref<1x128xf32, #tpu.memory_space<vmem>>, %arg4: memref<16x128xf32, #tpu.memory_space<vmem>>) attributes {dimension_semantics = [#tpu.dimension_semantics<parallel>], iteration_bounds = array<i64: 2>, scalar_prefetch = 0 : i64, scratch_operands = 0 : i64, tpu.core_type = #tpu.core_type<tc>, window_params = [{transform_indices = @transform_0, window_bounds = array<i64: 16, 128>}, {pipeline_mode = #tpu.pipeline_mode<synchronous>, transform_indices = @transform_1, window_bounds = array<i64: 128, 128>}, {pipeline_mode = #tpu.pipeline_mode<synchronous>, transform_indices = @transform_2, window_bounds = array<i64: 1, 128>}, {transform_indices = @transform_3, window_bounds = array<i64: 16, 128>}]} {
    %c0 = arith.constant 0 : index
    %c0_0 = arith.constant 0 : index
    %0 = vector.load %arg1[%c0, %c0_0] : memref<16x128xbf16, #tpu.memory_space<vmem>>, vector<16x128xbf16>
    %c0_1 = arith.constant 0 : index
    %c0_2 = arith.constant 0 : index
    %1 = vector.load %arg2[%c0_1, %c0_2] : memref<128x128xbf16, #tpu.memory_space<vmem>>, vector<128x128xbf16>
    %cst = arith.constant dense<0.000000e+00> : vector<16x128xf32>
    %2 = tpu.matmul %0, %1, %cst {dimension_numbers = #tpu.dot_dimension_numbers<[1], [0], [0], [1], [0, 0, 1, 1], [], []>} : vector<16x128xbf16>, vector<128x128xbf16>, vector<16x128xf32> -> vector<16x128xf32>
    %c0_3 = arith.constant 0 : index
    %c0_4 = arith.constant 0 : index
    %3 = vector.load %arg3[%c0_3, %c0_4] : memref<1x128xf32, #tpu.memory_space<vmem>>, vector<1x128xf32>
    %4 = vector.broadcast %3 : vector<1x128xf32> to vector<16x128xf32>
    %5 = arith.addf %2, %4 : vector<16x128xf32>
    %c0_5 = arith.constant 0 : index
    %c0_6 = arith.constant 0 : index
    %6 = vector.load %arg4[%c0_5, %c0_6] : memref<16x128xf32, #tpu.memory_space<vmem>>, vector<16x128xf32>
    tpu.vector_store %arg4[%c0_5, %c0_6], %5 {strides = array<i32>} : memref<16x128xf32, #tpu.memory_space<vmem>>, vector<16x128xf32>,
    return
  }
  func.func @transform_0(%arg0: i32) -> (i32, i32) {
    %c0_i32 = arith.constant 0 : i32
    %c0_i32_0 = arith.constant 0 : i32
    return %arg0, %c0_i32 : i32, i32
  }
  func.func @transform_1(%arg0: i32) -> (i32, i32) {
    %c0_i32 = arith.constant 0 : i32
    %c0_i32_0 = arith.constant 0 : i32
    %c0_i32_1 = arith.constant 0 : i32
    return %c0_i32, %c0_i32_0 : i32, i32
  }
  func.func @transform_2(%arg0: i32) -> (i32, i32) {
    %c0_i32 = arith.constant 0 : i32
    %c0_i32_0 = arith.constant 0 : i32
    %c0_i32_1 = arith.constant 0 : i32
    return %c0_i32, %c0_i32_0 : i32, i32
  }
  func.func @transform_3(%arg0: i32) -> (i32, i32) {
    %c0_i32 = arith.constant 0 : i32
    %c0_i32_0 = arith.constant 0 : i32
    return %arg0, %c0_i32 : i32, i32
  }
}

</mosaic_0001>

<bundles_post_ra>
// kernel: protbert_forward.9
= control target key start
LH: loop header
LB: loop body
LE: loop exit
PB: predicated region body
PF: predicated region fallthrough
CT: control target
= control target key end

     0   :  { %s417_s15 = smov 0   ;;  %s447_s0 = inlined_call_operand.vmem [shape: f32[32,128], index: 0, kind: input, shape index: {}]   ;;  %s448_s1 = inlined_call_operand.vmem [shape: f32[32,128], index: 1, kind: input, shape index: {}]   ;;  %s449_s2 = inlined_call_operand.vmem [shape: f32[1,128], index: 2, kind: input, shape index: {}]   ;;  %s450_s3 = inlined_call_operand.vmem [shape: f32[1,128], index: 3, kind: input, shape index: {}]   ;;  %s451_s4 = inlined_call_operand.vmem [shape: bf16[32,128], index: 4, kind: output, shape index: {}]  }
   0x1 LB: > { %s348_s16 = sadd.s32 4294967295, %s390_s15   ;;  %p352_p0 = scmp.ge.s32.totalorder %s390_s15, 1  ;;  %s390_s15 = sphi %s417_s15, %s14_s15  }
   0x2   : > { %p174_p1 = scmp.lt.s32.totalorder %s390_s15, 3 }
   0x4   : > { %p175_p2 = pnand %p352_p0, %p174_p1 }
   0x5   : > { %s353_s17 = sshll.u32 (!%p175_p2), %s348_s16, 1  ;;  %v359_v22 = vld [vmem:[%s449_s2] ss:$0 sm:$0xff] (!%p175_p2) }
   0x6   : > { %178 = sbr.rel (%p175_p2) target bundleno = 338 (0x152), region = 36  ;;  %p206_p3 = scmp.lt.s32.totalorder (!%p175_p2), %s353_s17, 3  ;;  %v360_v26 = vld [vmem:[%s450_s3] ss:$0 sm:$0xff] (!%p175_p2) }
   0xd   : > { %s453_s17 = smov (!%p206_p3, %s353_s17), 3 }
   0xe   : > { %s354_s18 = sshll.u32 %s453_s17, 3  ;;  %s358_s29 = sshll.u32 %s453_s17, 2 }
   0xf   : > { %s209_s21 = scalar_lea.vmem %s447_s0, %s354_s18  ;;  %s215_s24 = scalar_lea.vmem %s448_s1, %s354_s18 }
  0x10   : > { %v223_v0 = vld [vmem:[%s209_s21] sm:$0xff]  ;;  %v224_v2 = vld [vmem:[%s209_s21 + $0x8] sm:$0xff]  ;;  %s221_s6 = scalar_lea.vmem %s451_s4, %s358_s29 }
  0x11   : > { %v225_v1 = vld [vmem:[%s215_s24] sm:$0xff]  ;;  %v226_v4 = vld [vmem:[%s215_s24 + $0x8] sm:$0xff] }
  0x12   : > { %v227_v3 = vadd.f32 %v225_v1, %v223_v0  ;;  %v228_v5 = vadd.f32 %v226_v4, %v224_v2 }
  0x14   : > { %229 = vadd.xlane.f32.xlu0 %v227_v3 }
  0x18   : > { %231 = vadd.xlane.f32.xlu0 %v228_v5 }
  0xa1   : > { %v230_v6 = vpop.xlane.xlu0 %229 }
  0xa2   : > { %v234_v7 = vmul.f32 0.0078125, %v230_v6 }
  0xa4   : > { %v236_v8 = vsub.f32 %v227_v3, %v234_v7 }
  0xa5   : > { %v232_v9 = vpop.xlane.xlu0 %231 }
  0xa6   : > { %v235_v10 = vmul.f32 0.0078125, %v232_v9  ;;  %v238_v11 = vmul.f32 %v236_v8, %v236_v8 }
  0xa8   : > { %v237_v12 = vsub.f32 %v228_v5, %v235_v10  ;;  %240 = vadd.xlane.f32.xlu1 %v238_v11 }
  0xaa   : > { %v239_v13 = vmul.f32 %v237_v12, %v237_v12 }
  0xac   : > { %242 = vadd.xlane.f32.xlu1 %v239_v13 }
 0x135   : > { %v241_v14 = vpop.xlane.xlu1 %240 }
 0x136   : > { %v244_v15 = vmul.f32 0.0078125, %v241_v14 }
 0x138   : > { %v246_v16 = vadd.f32 1e-12, %v244_v15 }
 0x139   : > { %v243_v17 = vpop.xlane.xlu1 %242 }
 0x13a   : > { %380 = vrsqrt.f32 %v246_v16  ;;  %v245_v18 = vmul.f32 0.0078125, %v243_v17 }
 0x13c   : > { %v247_v19 = vadd.f32 1e-12, %v245_v18 }
 0x13e   : > { %382 = vrsqrt.f32 %v247_v19 }
 0x144   : > { %v381_v20 = vpop.eup %380 }
 0x145   : > { %v250_v21 = vmul.f32 %v381_v20, %v236_v8 }
 0x147   : > { %v259_v24 = vmul.f32 %v359_v22, %v250_v21 }
 0x148   : > { %v383_v23 = vpop.eup %382 }
 0x149   : > { %v251_v25 = vmul.f32 %v383_v23, %v237_v12  ;;  %v268_v28 = vadd.f32 %v360_v26, %v259_v24 }
 0x14b   : > { %v260_v27 = vmul.f32 %v359_v22, %v251_v25 }
 0x14d   : > { %v269_v29 = vadd.f32 %v360_v26, %v260_v27 }
 0x14f   : > { %v370_v30 = vpack.c.bf16 %v269_v29, %v268_v28 }
 0x151   : > { %371 = vst [vmem:[%s221_s6] sm:$0xff] %v370_v30  }
 0x152 PF: > { %s14_s15 = sadd.s32 1, %s390_s15  }
 0x153   : > { %p11_p4 = scmp.ge.s32.totalorder %s14_s15, 4  }
 0x155   :  { %13 = sbr.rel (!%p11_p4) target bundleno = 1 (0x1), region = 69 }

// kernel: protbert_forward.11
= control target key start
LH: loop header
LB: loop body
LE: loop exit
PB: predicated region body
PF: predicated region fallthrough
CT: control target
= control target key end

     0   :  { %s658_s21 = smov 0   ;;  %s716_s0 = inlined_call_operand.vmem [shape: bf16[32,128], index: 0, kind: input, shape index: {}]   ;;  %s717_s1 = inlined_call_operand.vmem [shape: bf16[128,128], index: 1, kind: input, shape index: {}]   ;;  %s718_s2 = inlined_call_operand.vmem [shape: f32[1,128], index: 2, kind: input, shape index: {}, may-alias: {2,5}]   ;;  %s719_s3 = inlined_call_operand.vmem [shape: bf16[32,128], index: 3, kind: input, shape index: {}]   ;;  %s720_s4 = inlined_call_operand.vmem [shape: f32[1,128], index: 4, kind: input, shape index: {}]   ;;  %s721_s5 = inlined_call_operand.vmem [shape: f32[1,128], index: 5, kind: input, shape index: {}, may-alias: {2,5}]   ;;  %s722_s6 = inlined_call_operand.vmem [shape: bf16[32,128], index: 6, kind: output, shape index: {}]  }
   0x1 LB: > { %s523_s22 = sadd.s32 4294967295, %s619_s21   ;;  %p527_p0 = scmp.ge.s32.totalorder %s619_s21, 1  ;;  %s619_s21 = sphi %s658_s21, %s16_s21  }
   0x2   : > { %p224_p1 = scmp.lt.s32.totalorder %s619_s21, 3 }
   0x4   : > { %p225_p2 = pnand %p527_p0, %p224_p1 }
   0x5   : > { %v600_v0 = vld [vmem:[%s717_s1] sm:$0xff] (!%p225_p2)   ;;  %v621_v1 = vmov (!%p225_p2), 0.0   ;;  %v601_v2 = vld [vmem:[%s717_s1 + $0x8] sm:$0xff] (!%p225_p2)   ;;  %vm622_vm0 = vmmov (!%p225_p2), 0   ;;  %s528_s27 = sshll.u32 (!%p225_p2), %s523_s22, 1  ;;  %v602_v3 = vld [vmem:[%s717_s1 + $0x10] sm:$0xff] (!%p225_p2)  }
   0x6   : > { %228 = sbr.rel (%p225_p2) target bundleno = 572 (0x23c), region = 44  ;;  %570 = vmatprep.subr.bf16.mxu0 (!%p225_p2), %v621_v1  ;;  %586 = vmatprep.mubr.msk.bf16.mxu0 (!%p225_p2), %vm622_vm0, %v621_v1  ;;  %p260_p3 = scmp.lt.s32.totalorder (!%p225_p2), %s528_s27, 3  ;;  %v603_v4 = vld [vmem:[%s717_s1 + $0x18] sm:$0xff] (!%p225_p2)   ;;  %v604_v5 = vld [vmem:[%s717_s1 + $0x20] sm:$0xff] (!%p225_p2)   ;;  %v605_v6 = vld [vmem:[%s717_s1 + $0x28] sm:$0xff] (!%p225_p2)  }
   0x7   : > { %571 = vmatpush3.bf16.msra.mxu0 (!%p225_p2), %v600_v0  ;;  %v606_v7 = vld [vmem:[%s717_s1 + $0x30] sm:$0xff] (!%p225_p2)   ;;  %v607_v8 = vld [vmem:[%s717_s1 + $0x38] sm:$0xff] (!%p225_p2)   ;;  %v534_v11 = vld [vmem:[%s718_s2] ss:$0 sm:$0xff] (!%p225_p2) }
   0x8   : > { %572 = vmatprep.subr.bf16.mxu0 (!%p225_p2), %v621_v1  ;;  %v544_v38 = vld [vmem:[%s720_s4] ss:$0 sm:$0xff] (!%p225_p2) }
   0x9   : > { %v545_v42 = vld [vmem:[%s721_s5] ss:$0 sm:$0xff] (!%p225_p2) }
   0xb   : > { %573 = vmatpush3.bf16.msra.mxu0 (!%p225_p2), %v601_v2 }
   0xc   : > { %574 = vmatprep.subr.bf16.mxu0 (!%p225_p2), %v621_v1 }
   0xd   : > { %s724_s27 = smov (!%p260_p3, %s528_s27), 3 }
   0xe   : > { %s675_s30 = sshll.u32 %s724_s27, 2 }
   0xf   : > { %s263_s9 = scalar_lea.vmem %s716_s0, %s675_s30  ;;  %575 = vmatpush3.bf16.msra.mxu0 %v602_v3  ;;  %s269_s23 = scalar_lea.vmem %s719_s3, %s675_s30 }
  0x10   : > { %576 = vmatprep.subr.bf16.mxu0 %v621_v1  ;;  %v608_v9 = vld [vmem:[%s263_s9] sm:$0xff]   ;;  %s275_s9 = scalar_lea.vmem %s722_s6, %s675_s30 }
  0x11   : > { %v553_v10 = vld [vmem:[%s269_s23] sm:$0xff]  }
  0x12   : > { %v554_v12 = vunpack.c.l.bf16 %v553_v10  ;;  %v555_v20 = vunpack.c.h.bf16 %v553_v10 }
  0x13   : > { %577 = vmatpush3.bf16.msra.mxu0 %v603_v4 }
  0x14   : > { %578 = vmatprep.subr.bf16.mxu0 %v621_v1 }
  0x17   : > { %579 = vmatpush3.bf16.msra.mxu0 %v604_v5 }
  0x18   : > { %580 = vmatprep.subr.bf16.mxu0 %v621_v1 }
  0x1b   : > { %581 = vmatpush3.bf16.msra.mxu0 %v605_v6 }
  0x1c   : > { %582 = vmatprep.subr.bf16.mxu0 %v621_v1 }
  0x1f   : > { %583 = vmatpush3.bf16.msra.mxu0 %v606_v7 }
  0x20   : > { %584 = vmatprep.subr.bf16.mxu0 %v621_v1 }
  0x23   : > { %585 = vmatpush3.bf16.msra.mxu0 %v607_v8 }
  0x26   : > { %587 = vmatmul.mubr.bf16.vlgmr.msra.gmra.mrb[0].mxu0 %v608_v9 }
  0xf9   : > { %v391_v13 = vpop.f32.mrb[0].mxu0 }
  0xfa   : > { %v392_v14 = vadd.f32 %v534_v11, %v391_v13  ;;  %v588_v15 = vpop.f32.mrb[1].mxu0 }
  0xfb   : > { %v394_v16 = vpop.f32.mrb[2].mxu0 }
  0xfc   : > { %v395_v17 = vadd.f32 %v534_v11, %v394_v16  ;;  %v589_v18 = vpop.f32.mrb[3].mxu0  ;;  %v402_v19 = vadd.f32 %v554_v12, %v392_v14 }
  0xfe   : > { %404 = vadd.xlane.f32.xlu0 %v402_v19  ;;  %v403_v21 = vadd.f32 %v555_v20, %v395_v17 }
 0x102   : > { %406 = vadd.xlane.f32.xlu0 %v403_v21 }
 0x18b   : > { %v405_v22 = vpop.xlane.xlu0 %404 }
 0x18c   : > { %v409_v23 = vmul.f32 0.0078125, %v405_v22 }
 0x18e   : > { %v411_v24 = vsub.f32 %v402_v19, %v409_v23 }
 0x18f   : > { %v407_v25 = vpop.xlane.xlu0 %406 }
 0x190   : > { %v410_v26 = vmul.f32 0.0078125, %v407_v25  ;;  %v413_v27 = vmul.f32 %v411_v24, %v411_v24 }
 0x192   : > { %v412_v28 = vsub.f32 %v403_v21, %v410_v26  ;;  %415 = vadd.xlane.f32.xlu1 %v413_v27 }
 0x194   : > { %v414_v29 = vmul.f32 %v412_v28, %v412_v28 }
 0x196   : > { %417 = vadd.xlane.f32.xlu1 %v414_v29 }
 0x21f   : > { %v416_v30 = vpop.xlane.xlu1 %415 }
 0x220   : > { %v419_v31 = vmul.f32 0.0078125, %v416_v30 }
 0x222   : > { %v421_v32 = vadd.f32 1e-12, %v419_v31 }
 0x223   : > { %v418_v33 = vpop.xlane.xlu1 %417 }
 0x224   : > { %609 = vrsqrt.f32 %v421_v32  ;;  %v420_v34 = vmul.f32 0.0078125, %v418_v33 }
 0x226   : > { %v422_v35 = vadd.f32 1e-12, %v420_v34 }
 0x228   : > { %611 = vrsqrt.f32 %v422_v35 }
 0x22e   : > { %v610_v36 = vpop.eup %609 }
 0x22f   : > { %v425_v37 = vmul.f32 %v610_v36, %v411_v24 }
 0x231   : > { %v434_v40 = vmul.f32 %v544_v38, %v425_v37 }
 0x232   : > { %v612_v39 = vpop.eup %611 }
 0x233   : > { %v426_v41 = vmul.f32 %v612_v39, %v412_v28  ;;  %v443_v44 = vadd.f32 %v545_v42, %v434_v40 }
 0x235   : > { %v435_v43 = vmul.f32 %v544_v38, %v426_v41 }
 0x237   : > { %v444_v45 = vadd.f32 %v545_v42, %v435_v43 }
 0x239   : > { %v559_v46 = vpack.c.bf16 %v444_v45, %v443_v44 }
 0x23b   : > { %560 = vst [vmem:[%s275_s9] sm:$0xff] %v559_v46  }
 0x23c PF: > { %s16_s21 = sadd.s32 1, %s619_s21  }
 0x23d   : > { %p13_p4 = scmp.ge.s32.totalorder %s16_s21, 4  }
 0x23f   :  { %15 = sbr.rel (!%p13_p4) target bundleno = 1 (0x1), region = 77 }

// kernel: protbert_forward.12
= control target key start
LH: loop header
LB: loop body
LE: loop exit
PB: predicated region body
PF: predicated region fallthrough
CT: control target
= control target key end

     0   :  { %s957_s24 = smov 0   ;;  %s1094_s0 = inlined_call_operand.vmem [shape: bf16[32,128], index: 0, kind: input, shape index: {}]   ;;  %s1095_s1 = inlined_call_operand.vmem [shape: bf16[128,256], index: 1, kind: input, shape index: {}]   ;;  %s1096_s2 = inlined_call_operand.vmem [shape: f32[1,256], index: 2, kind: input, shape index: {}]   ;;  %s1097_s3 = inlined_call_operand.vmem [shape: bf16[256,128], index: 3, kind: input, shape index: {}]   ;;  %s1098_s4 = inlined_call_operand.vmem [shape: f32[1,128], index: 4, kind: input, shape index: {}, may-alias: {4,6}]   ;;  %s1099_s5 = inlined_call_operand.vmem [shape: f32[1,128], index: 5, kind: input, shape index: {}]   ;;  %s1100_s6 = inlined_call_operand.vmem [shape: f32[1,128], index: 6, kind: input, shape index: {}, may-alias: {4,6}]   ;;  %s1101_s7 = inlined_call_operand.vmem [shape: bf16[32,128], index: 7, kind: output, shape index: {}]  }
   0x1 LB: > { %s767_s25 = sadd.s32 4294967295, %s914_s24   ;;  %p771_p0 = scmp.ge.s32.totalorder %s914_s24, 1  ;;  %s914_s24 = sphi %s957_s24, %s17_s24  }
   0x2   : > { %p238_p1 = scmp.lt.s32.totalorder %s914_s24, 3 }
   0x4   : > { %p239_p2 = pnand %p771_p0, %p238_p1 }
   0x5   : > { %v854_v0 = vld [vmem:[%s1095_s1 + $0x4] ss:$8 sps:$4 sm:$0xff] (!%p239_p2)   ;;  %s772_s28 = sshll.u32 (!%p239_p2), %s767_s25, 1  ;;  %v856_v1 = vld [vmem:[%s1095_s1] ss:$8 sps:$4 sm:$0xff] (!%p239_p2)   ;;  %v916_v2 = vmov (!%p239_p2), 0   ;;  %v303_v34 = vlaneseq (!%p239_p2) }
   0x6   : > { %242 = sbr.rel (%p239_p2) target bundleno = 822 (0x336), region = 48  ;;  %431 = vmatprep.mubr.bf16.mxu0 (!%p239_p2), %v916_v2  ;;  %399 = vmatprep.subr.bf16.mxu0 (!%p239_p2), %v854_v0  ;;  %v857_v3 = vld [vmem:[%s1095_s1 + $0x14] ss:$8 sps:$4 sm:$0xff] (!%p239_p2)   ;;  %p271_p3 = scmp.lt.s32.totalorder (!%p239_p2), %s772_s28, 3  ;;  %v859_v4 = vld [vmem:[%s1095_s1 + $0x10] ss:$8 sps:$4 sm:$0xff] (!%p239_p2)  }
   0x7   : > { %400 = vmatpush1.bf16.msra.mxu0 (!%p239_p2), %v856_v1  ;;  %v860_v5 = vld [vmem:[%s1095_s1 + $0x24] ss:$8 sps:$4 sm:$0xff] (!%p239_p2)   ;;  %v862_v6 = vld [vmem:[%s1095_s1 + $0x20] ss:$8 sps:$4 sm:$0xff] (!%p239_p2)   ;;  %v863_v7 = vld [vmem:[%s1095_s1 + $0x34] ss:$8 sps:$4 sm:$0xff] (!%p239_p2)  }
   0x8   : > { %401 = vmatprep.subr.bf16.mxu0 (!%p239_p2), %v857_v3  ;;  %v865_v8 = vld [vmem:[%s1095_s1 + $0x30] ss:$8 sps:$4 sm:$0xff] (!%p239_p2)   ;;  %v866_v9 = vld [vmem:[%s1095_s1 + $0x44] ss:$8 sps:$4 sm:$0xff] (!%p239_p2)   ;;  %v868_v10 = vld [vmem:[%s1095_s1 + $0x40] ss:$8 sps:$4 sm:$0xff] (!%p239_p2)  }
   0x9   : > { %v869_v11 = vld [vmem:[%s1095_s1 + $0x54] ss:$8 sps:$4 sm:$0xff] (!%p239_p2)   ;;  %v871_v12 = vld [vmem:[%s1095_s1 + $0x50] ss:$8 sps:$4 sm:$0xff] (!%p239_p2)   ;;  %v872_v13 = vld [vmem:[%s1095_s1 + $0x64] ss:$8 sps:$4 sm:$0xff] (!%p239_p2)  }
   0xa   : > { %v874_v14 = vld [vmem:[%s1095_s1 + $0x60] ss:$8 sps:$4 sm:$0xff] (!%p239_p2)   ;;  %v875_v15 = vld [vmem:[%s1095_s1 + $0x74] ss:$8 sps:$4 sm:$0xff] (!%p239_p2)   ;;  %v877_v16 = vld [vmem:[%s1095_s1 + $0x70] ss:$8 sps:$4 sm:$0xff] (!%p239_p2)  }
   0xb   : > { %402 = vmatpush1.bf16.msra.mxu0 (!%p239_p2), %v859_v4  ;;  %v879_v18 = vld [vmem:[%s1097_s3 + $0x40] sm:$0xff] (!%p239_p2)   ;;  %v881_v20 = vld [vmem:[%s1097_s3 + $0x48] sm:$0xff] (!%p239_p2)   ;;  %v883_v22 = vld [vmem:[%s1097_s3 + $0x50] sm:$0xff] (!%p239_p2)   ;;  %v304_v35 = vshrl.u32 (!%p239_p2), %v303_v34, 7 }
   0xc   : > { %403 = vmatprep.subr.bf16.mxu0 (!%p239_p2), %v860_v5  ;;  %v880_v19 = vld [vmem:[%s1097_s3] sm:$0xff] (!%p239_p2)   ;;  %823 = vmatprep.subr.bf16.mxu1 (!%p239_p2), %v879_v18  ;;  %v882_v21 = vld [vmem:[%s1097_s3 + $0x8] sm:$0xff] (!%p239_p2)   ;;  %v884_v23 = vld [vmem:[%s1097_s3 + $0x10] sm:$0xff] (!%p239_p2)  }
   0xd   : > { %s1103_s28 = smov (!%p271_p3, %s772_s28), 3  ;;  %824 = vmatpush3.bf16.msra.mxu1 %v880_v19  ;;  %v885_v24 = vld [vmem:[%s1097_s3 + $0x58] sm:$0xff]   ;;  %v887_v26 = vld [vmem:[%s1097_s3 + $0x60] sm:$0xff]   ;;  %v889_v28 = vld [vmem:[%s1097_s3 + $0x68] sm:$0xff]   ;;  %v305_v36 = vsub.s32 0, %v304_v35  ;;  %v309_v38 = vsub.s32 1, %v304_v35 }
   0xe   : > { %s773_s20 = sshll.u32 %s1103_s28, 2  ;;  %825 = vmatprep.subr.bf16.mxu1 %v881_v20  ;;  %v886_v25 = vld [vmem:[%s1097_s3 + $0x18] sm:$0xff]   ;;  %v888_v27 = vld [vmem:[%s1097_s3 + $0x20] sm:$0xff]   ;;  %v890_v29 = vld [vmem:[%s1097_s3 + $0x28] sm:$0xff]  }
   0xf   : > { %404 = vmatpush1.bf16.msra.mxu0 %v862_v6  ;;  %s274_s16 = scalar_lea.vmem %s1094_s0, %s773_s20  ;;  %v891_v30 = vld [vmem:[%s1097_s3 + $0x70] sm:$0xff]   ;;  %v893_v32 = vld [vmem:[%s1097_s3 + $0x78] sm:$0xff]   ;;  %v301_v37 = vld [vmem:[%s1096_s2] sm:$0x3]  ;;  %s280_s22 = scalar_lea.vmem %s1101_s7, %s773_s20 }
  0x10   : > { %405 = vmatprep.subr.bf16.mxu0 %v863_v7  ;;  %v1021_v17 = vld [vmem:[%s274_s16] sm:$0xff]   ;;  %v892_v31 = vld [vmem:[%s1097_s3 + $0x30] sm:$0xff]   ;;  %v894_v33 = vld [vmem:[%s1097_s3 + $0x38] sm:$0xff]   ;;  %v306_v39 = vrot.slane %v301_v37, %v305_v36  ;;  %v310_v40 = vrot.slane %v301_v37, %v309_v38 }
  0x11   : > { %826 = vmatpush3.bf16.msra.mxu1 %v882_v21  ;;  %v657_v35 = vunpack.c.h.bf16 %v1021_v17 }
  0x12   : > { %827 = vmatprep.subr.bf16.mxu1 %v883_v22 }
  0x13   : > { %406 = vmatpush1.bf16.msra.mxu0 %v865_v8 }
  0x14   : > { %407 = vmatprep.subr.bf16.mxu0 %v866_v9 }
  0x15   : > { %828 = vmatpush3.bf16.msra.mxu1 %v884_v23 }
  0x16   : > { %829 = vmatprep.subr.bf16.mxu1 %v885_v24 }
  0x17   : > { %408 = vmatpush1.bf16.msra.mxu0 %v868_v10 }
  0x18   : > { %409 = vmatprep.subr.bf16.mxu0 %v869_v11 }
  0x19   : > { %830 = vmatpush3.bf16.msra.mxu1 %v886_v25  ;;  %v793_v25 = vld [vmem:[%s1098_s4] ss:$0 sm:$0xff] }
  0x1a   : > { %831 = vmatprep.subr.bf16.mxu1 %v887_v26 }
  0x1b   : > { %410 = vmatpush1.bf16.msra.mxu0 %v871_v12 }
  0x1c   : > { %411 = vmatprep.subr.bf16.mxu0 %v872_v13 }
  0x1d   : > { %832 = vmatpush3.bf16.msra.mxu1 %v888_v27 }
  0x1e   : > { %833 = vmatprep.subr.bf16.mxu1 %v889_v28 }
  0x1f   : > { %412 = vmatpush1.bf16.msra.mxu0 %v874_v14 }
  0x20   : > { %413 = vmatprep.subr.bf16.mxu0 %v875_v15 }
  0x21   : > { %834 = vmatpush3.bf16.msra.mxu1 %v890_v29  ;;  %v656_v29 = vunpack.c.l.bf16 %v1021_v17 }
  0x22   : > { %835 = vmatprep.subr.bf16.mxu1 %v891_v30 }
  0x23   : > { %414 = vmatpush1.bf16.msra.mxu0 %v877_v16 }
  0x25   : > { %836 = vmatpush3.bf16.msra.mxu1 %v892_v31 }
  0x26   : > { %432 = vmatmul.mubr.bf16.vlgmr.msra.gmra.mrb[0].mxu0 %v1021_v17  ;;  %837 = vmatprep.subr.bf16.mxu1 %v893_v32 }
  0x29   : > { %838 = vmatpush3.bf16.msra.mxu1 %v894_v33 }
  0xf9   : > { %v433_v41 = vpop.f32.mrb[0].mxu0 }
  0xfa   : > { %v434_v42 = vadd.f32 %v433_v41, %v306_v39  ;;  %v435_v43 = vpop.f32.mrb[1].mxu0 }
  0xfb   : > { %v436_v44 = vadd.f32 %v435_v43, %v310_v40  ;;  %v437_v45 = vpop.f32.mrb[2].mxu0 }
  0xfc   : > { %v442_v46 = vmul.f32 %v434_v42, %v434_v42  ;;  %v438_v47 = vadd.f32 %v437_v45, %v306_v39  ;;  %v439_v48 = vpop.f32.mrb[3].mxu0 }
  0xfd   : > { %v443_v49 = vmul.f32 %v436_v44, %v436_v44  ;;  %v440_v50 = vadd.f32 %v439_v48, %v310_v40 }
  0xfe   : > { %v446_v51 = vmul.f32 %v442_v46, %v434_v42  ;;  %v444_v52 = vmul.f32 %v438_v47, %v438_v47 }
  0xff   : > { %v447_v53 = vmul.f32 %v443_v49, %v436_v44  ;;  %v445_v54 = vmul.f32 %v440_v50, %v440_v50 }
 0x100   : > { %v450_v55 = vmul.f32 0.044715, %v446_v51  ;;  %v448_v56 = vmul.f32 %v444_v52, %v438_v47  ;;  %v810_v52 = vld [vmem:[%s1099_s5] ss:$0 sm:$0xff] }
 0x101   : > { %v451_v57 = vmul.f32 0.044715, %v447_v53  ;;  %v449_v58 = vmul.f32 %v445_v54, %v440_v50 }
 0x102   : > { %v454_v59 = vadd.f32 %v450_v55, %v434_v42  ;;  %v452_v60 = vmul.f32 0.044715, %v448_v56  ;;  %v811_v56 = vld [vmem:[%s1100_s6] ss:$0 sm:$0xff] }
 0x103   : > { %v453_v61 = vmul.f32 0.044715, %v449_v58  ;;  %v455_v62 = vadd.f32 %v451_v57, %v436_v44 }
 0x104   : > { %v458_v63 = vmul.f32 0.7978846, %v454_v59  ;;  %v456_v0 = vadd.f32 %v452_v60, %v438_v47 }
 0x105   : > { %v457_v1 = vadd.f32 %v453_v61, %v440_v50  ;;  %v459_v2 = vmul.f32 0.7978846, %v455_v62 }
 0x106   : > { %896 = vtanh.f32 %v458_v63  ;;  %v460_v3 = vmul.f32 0.7978846, %v456_v0 }
 0x107   : > { %v461_v4 = vmul.f32 0.7978846, %v457_v1  ;;  %898 = vtanh.f32 %v459_v2 }
 0x108   : > { %900 = vtanh.f32 %v460_v3 }
 0x109   : > { %902 = vtanh.f32 %v461_v4 }
 0x110   : > { %v897_v5 = vpop.eup %896 }
 0x111   : > { %v899_v6 = vpop.eup %898  ;;  %v466_v7 = vadd.f32 1.0, %v897_v5 }
 0x112   : > { %v901_v8 = vpop.eup %900  ;;  %v467_v9 = vadd.f32 1.0, %v899_v6 }
 0x113   : > { %v903_v10 = vpop.eup %902  ;;  %v468_v11 = vadd.f32 1.0, %v901_v8  ;;  %v470_v12 = vmul.f32 0.5, %v466_v7 }
 0x114   : > { %v469_v13 = vadd.f32 1.0, %v903_v10  ;;  %v471_v14 = vmul.f32 0.5, %v467_v9 }
 0x115   : > { %v472_v15 = vmul.f32 0.5, %v468_v11  ;;  %v474_v18 = vmul.f32 %v470_v12, %v434_v42 }
 0x116   : > { %v473_v16 = vmul.f32 0.5, %v469_v13  ;;  %v475_v20 = vmul.f32 %v471_v14, %v436_v44 }
 0x117   : > { %v476_v19 = vmul.f32 %v472_v15, %v438_v47 }
 0x118   : > { %v477_v21 = vmul.f32 %v473_v16, %v440_v50 }
 0x119   : > { %v478_v22 = vpack.c.bf16 %v476_v19, %v474_v18 }
 0x11a   : > { %v479_v23 = vpack.c.bf16 %v477_v21, %v475_v20 }
 0x11c   : > { %647 = vmatprep.mubr.bf16.mxu1 %v479_v23 }
 0x11d   : > { %648 = vmatmul.mubr.bf16.vlgmr.msra.gmra.mrb[0].mxu1 %v478_v22 }
 0x1f0   : > { %v839_v24 = vpop.f32.mrb[0].mxu1 }
 0x1f1   : > { %v840_v26 = vpop.f32.mrb[1].mxu1 }
 0x1f2   : > { %v841_v27 = vadd.f32 %v840_v26, %v839_v24  ;;  %v842_v28 = vpop.f32.mrb[2].mxu1 }
 0x1f3   : > { %v843_v30 = vpop.f32.mrb[3].mxu1 }
 0x1f4   : > { %v650_v31 = vadd.f32 %v841_v27, %v793_v25  ;;  %v844_v32 = vadd.f32 %v843_v30, %v842_v28 }
 0x1f6   : > { %v653_v33 = vadd.f32 %v844_v32, %v793_v25  ;;  %v658_v34 = vadd.f32 %v656_v29, %v650_v31 }
 0x1f8   : > { %660 = vadd.xlane.f32.xlu0 %v658_v34  ;;  %v659_v36 = vadd.f32 %v657_v35, %v653_v33 }
 0x1fc   : > { %662 = vadd.xlane.f32.xlu0 %v659_v36 }
 0x285   : > { %v661_v37 = vpop.xlane.xlu0 %660 }
 0x286   : > { %v665_v38 = vmul.f32 0.0078125, %v661_v37 }
 0x288   : > { %v667_v39 = vsub.f32 %v658_v34, %v665_v38 }
 0x289   : > { %v663_v40 = vpop.xlane.xlu0 %662 }
 0x28a   : > { %v666_v41 = vmul.f32 0.0078125, %v663_v40  ;;  %v669_v42 = vmul.f32 %v667_v39, %v667_v39 }
 0x28c   : > { %v668_v43 = vsub.f32 %v659_v36, %v666_v41  ;;  %671 = vadd.xlane.f32.xlu1 %v669_v42 }
 0x28e   : > { %v670_v44 = vmul.f32 %v668_v43, %v668_v43 }
 0x290   : > { %673 = vadd.xlane.f32.xlu1 %v670_v44 }
 0x319   : > { %v672_v45 = vpop.xlane.xlu1 %671 }
 0x31a   : > { %v675_v46 = vmul.f32 0.0078125, %v672_v45 }
 0x31c   : > { %v677_v47 = vadd.f32 1e-12, %v675_v46 }
 0x31d   : > { %v674_v48 = vpop.xlane.xlu1 %673 }
 0x31e   : > { %904 = vrsqrt.f32 %v677_v47  ;;  %v676_v17 = vmul.f32 0.0078125, %v674_v48 }
 0x320   : > { %v678_v49 = vadd.f32 1e-12, %v676_v17 }
 0x322   : > { %906 = vrsqrt.f32 %v678_v49 }
 0x328   : > { %v905_v50 = vpop.eup %904 }
 0x329   : > { %v681_v51 = vmul.f32 %v905_v50, %v667_v39 }
 0x32b   : > { %v690_v54 = vmul.f32 %v810_v52, %v681_v51 }
 0x32c   : > { %v907_v53 = vpop.eup %906 }
 0x32d   : > { %v682_v55 = vmul.f32 %v907_v53, %v668_v43  ;;  %v699_v58 = vadd.f32 %v811_v56, %v690_v54 }
 0x32f   : > { %v691_v57 = vmul.f32 %v810_v52, %v682_v55 }
 0x331   : > { %v700_v59 = vadd.f32 %v811_v56, %v691_v57 }
 0x333   : > { %v821_v60 = vpack.c.bf16 %v700_v59, %v699_v58 }
 0x335   : > { %822 = vst [vmem:[%s280_s22] sm:$0xff] %v821_v60  }
 0x336 PF: > { %s17_s24 = sadd.s32 1, %s914_s24  }
 0x337   : > { %p14_p4 = scmp.ge.s32.totalorder %s17_s24, 4  }
 0x339   :  { %16 = sbr.rel (!%p14_p4) target bundleno = 1 (0x1), region = 78 }

// kernel: protbert_forward.10
= control target key start
LH: loop header
LB: loop body
LE: loop exit
PB: predicated region body
PF: predicated region fallthrough
CT: control target
= control target key end

     0   :  { %s1384_s15 = smov 0   ;;  %s1594_s0 = inlined_call_operand.vmem [shape: bf16[2,16,128], index: 0, kind: input, shape index: {}]   ;;  %s1595_s1 = inlined_call_operand.vmem [shape: bf16[128,384], index: 1, kind: input, shape index: {}]   ;;  %s1596_s2 = inlined_call_operand.vmem [shape: f32[1,384], index: 2, kind: input, shape index: {}]   ;;  %s1597_s3 = inlined_call_operand.vmem [shape: f32[2,1,16], index: 3, kind: input, shape index: {}]   ;;  %s1598_s4 = inlined_call_operand.vmem [shape: bf16[2,16,128], index: 4, kind: output, shape index: {}]  }
   0x1 LB: > { %s1110_s16 = sadd.s32 4294967295, %s1351_s15   ;;  %p1114_p0 = scmp.ge.s32.totalorder %s1351_s15, 1  ;;  %s1351_s15 = sphi %s1384_s15, %s14_s15  }
   0x2   : > { %p170_p1 = scmp.lt.s32.totalorder %s1351_s15, 3 }
   0x4   : > { %p171_p2 = pnand %p1114_p0, %p170_p1 }
   0x5   : > { %v1280_v0 = vld [vmem:[%s1595_s1 + $0x4] ss:$12 sps:$4 sm:$0xff] (!%p171_p2)   ;;  %p199_p3 = scmp.lt.s32.totalorder (!%p171_p2), %s1110_s16, 1  ;;  %v1282_v1 = vld [vmem:[%s1595_s1] ss:$12 sps:$4 sm:$0xff] (!%p171_p2)   ;;  %v1353_v2 = vmov (!%p171_p2), 0   ;;  %v249_v19 = vlaneseq (!%p171_p2) }
   0x6   : > { %174 = sbr.rel (%p171_p2) target bundleno = 1264 (0x4f0), region = 36  ;;  %430 = vmatprep.mubr.bf16.mxu0 (!%p171_p2), %v1353_v2  ;;  %398 = vmatprep.subr.bf16.mxu0 (!%p171_p2), %v1280_v0  ;;  %v1283_v3 = vld [vmem:[%s1595_s1 + $0x1c] ss:$12 sps:$4 sm:$0xff] (!%p171_p2)   ;;  %v1285_v4 = vld [vmem:[%s1595_s1 + $0x18] ss:$12 sps:$4 sm:$0xff] (!%p171_p2)   ;;  %v1354_v18 = vmov (!%p171_p2), 0.0  }
   0x7   : > { %399 = vmatpush1.bf16.msra.mxu0 (!%p171_p2), %v1282_v1  ;;  %v1286_v5 = vld [vmem:[%s1595_s1 + $0x34] ss:$12 sps:$4 sm:$0xff] (!%p171_p2)   ;;  %v1288_v6 = vld [vmem:[%s1595_s1 + $0x30] ss:$12 sps:$4 sm:$0xff] (!%p171_p2)   ;;  %v1289_v7 = vld [vmem:[%s1595_s1 + $0x4c] ss:$12 sps:$4 sm:$0xff] (!%p171_p2)   ;;  %1198 = vmatprep.subr.bf16.mxu1 (!%p171_p2), %v1354_v18 }
   0x8   : > { %400 = vmatprep.subr.bf16.mxu0 (!%p171_p2), %v1283_v3  ;;  %v1291_v8 = vld [vmem:[%s1595_s1 + $0x48] ss:$12 sps:$4 sm:$0xff] (!%p171_p2)   ;;  %v1292_v9 = vld [vmem:[%s1595_s1 + $0x64] ss:$12 sps:$4 sm:$0xff] (!%p171_p2)   ;;  %v1294_v10 = vld [vmem:[%s1595_s1 + $0x60] ss:$12 sps:$4 sm:$0xff] (!%p171_p2)  }
   0x9   : > { %v1295_v11 = vld [vmem:[%s1595_s1 + $0x7c] ss:$12 sps:$4 sm:$0xff] (!%p171_p2)   ;;  %v1297_v12 = vld [vmem:[%s1595_s1 + $0x78] ss:$12 sps:$4 sm:$0xff] (!%p171_p2)   ;;  %v1298_v13 = vld [vmem:[%s1595_s1 + $0x94] ss:$12 sps:$4 sm:$0xff] (!%p171_p2)  }
   0xa   : > { %v1300_v14 = vld [vmem:[%s1595_s1 + $0x90] ss:$12 sps:$4 sm:$0xff] (!%p171_p2)   ;;  %v1301_v15 = vld [vmem:[%s1595_s1 + $0xac] ss:$12 sps:$4 sm:$0xff] (!%p171_p2)   ;;  %v1303_v16 = vld [vmem:[%s1595_s1 + $0xa8] ss:$12 sps:$4 sm:$0xff] (!%p171_p2)  }
   0xb   : > { %401 = vmatpush1.bf16.msra.mxu0 (!%p171_p2), %v1285_v4  ;;  %vm1355_vm0 = vmmov (!%p171_p2), 0   ;;  %v1457_v20 = vshrl.u32 (!%p171_p2), %v249_v19, 7  ;;  %v1463_v22 = vld [vmem:[%s1596_s2] sm:$0x7] (!%p171_p2)  ;;  %vm492_vm1 = vcmask (!%p171_p2), 261120   ;;  %s1356_s6 = smov (!%p171_p2), 64  }
   0xc   : > { %402 = vmatprep.subr.bf16.mxu0 (!%p171_p2), %v1286_v5  ;;  %1214 = vmatprep.mubr.msk.bf16.mxu1 (!%p171_p2), %vm1355_vm0, %v1354_v18  ;;  %s1357_s7 = smov (!%p171_p2), 96   ;;  %v1305_v37 = vld [vmem:[%s1595_s1 + $0x8] ss:$12 sps:$4 sm:$0xff] (!%p171_p2)   ;;  %v1306_v38 = vld [vmem:[%s1595_s1 + $0x20] ss:$12 sps:$4 sm:$0xff] (!%p171_p2)   ;;  %vm544_vm2 = vcmask (!%p171_p2), 130048  }
   0xd   : > { %s1600_s16 = smov (!%p199_p3, %s1110_s16), 1  ;;  %v251_v21 = vsub.s32 0, %v1457_v20  ;;  %v255_v23 = vsub.s32 1, %v1457_v20  ;;  %1199 = vmatpush3.bf16.msra.mxu1 %v1305_v37  ;;  %v1307_v39 = vld [vmem:[%s1595_s1 + $0x38] ss:$12 sps:$4 sm:$0xff]   ;;  %v259_v1 = vsub.s32 2, %v1457_v20 }
   0xe   : > { %s1163_s27 = sshll.u32 %s1600_s16, 3  ;;  %1200 = vmatprep.subr.bf16.mxu1 %v1354_v18  ;;  %v1308_v40 = vld [vmem:[%s1595_s1 + $0x50] ss:$12 sps:$4 sm:$0xff]   ;;  %v1309_v41 = vld [vmem:[%s1595_s1 + $0x68] ss:$12 sps:$4 sm:$0xff]   ;;  %s206_s30 = scalar_lea.vmem %s1597_s3, %s1600_s16  ;;  %vm620_vm3 = vcmask 257024  }
   0xf   : > { %s203_s8 = scalar_lea.vmem %s1594_s0, %s1163_s27  ;;  %403 = vmatpush1.bf16.msra.mxu0 %v1288_v6  ;;  %v252_v24 = vrot.slane %v1463_v22, %v251_v21  ;;  %v256_v26 = vrot.slane %v1463_v22, %v255_v23  ;;  %v1310_v42 = vld [vmem:[%s1595_s1 + $0x80] ss:$12 sps:$4 sm:$0xff]   ;;  %v1311_v43 = vld [vmem:[%s1595_s1 + $0x98] ss:$12 sps:$4 sm:$0xff]   ;;  %v1312_v44 = vld [vmem:[%s1595_s1 + $0xb0] ss:$12 sps:$4 sm:$0xff]   ;;  %v260_v2 = vrot.slane %v1463_v22, %v259_v1  ;;  %s1575_s10 = scalar_lea.vmem %s1598_s4, %s1163_s27 }
  0x10   : > { %404 = vmatprep.subr.bf16.mxu0 %v1289_v7  ;;  %v1448_v17 = vld [vmem:[%s203_s8] sm:$0xff]   ;;  %s1358_s8 = smov 32   ;;  %vm763_vm4 = vcmask 519424   ;;  %vm903_vm5 = vcmask 781824   ;;  %vm1043_vm6 = vcmask 1044224  }
  0x11   : > { %1201 = vmatpush3.bf16.msra.mxu1 %v1306_v38  ;;  %v1144_v54 = vld [vmem:[%s206_s30] ss:$0 sm:$0xff] }
  0x12   : > { %1202 = vmatprep.subr.bf16.mxu1 %v1354_v18 }
  0x13   : > { %405 = vmatpush1.bf16.msra.mxu0 %v1291_v8 }
  0x14   : > { %406 = vmatprep.subr.bf16.mxu0 %v1292_v9 }
  0x15   : > { %1203 = vmatpush3.bf16.msra.mxu1 %v1307_v39 }
  0x16   : > { %1204 = vmatprep.subr.bf16.mxu1 %v1354_v18 }
  0x17   : > { %407 = vmatpush1.bf16.msra.mxu0 %v1294_v10 }
  0x18   : > { %408 = vmatprep.subr.bf16.mxu0 %v1295_v11 }
  0x19   : > { %1205 = vmatpush3.bf16.msra.mxu1 %v1308_v40 }
  0x1a   : > { %1206 = vmatprep.subr.bf16.mxu1 %v1354_v18 }
  0x1b   : > { %409 = vmatpush1.bf16.msra.mxu0 %v1297_v12 }
  0x1c   : > { %410 = vmatprep.subr.bf16.mxu0 %v1298_v13 }
  0x1d   : > { %1207 = vmatpush3.bf16.msra.mxu1 %v1309_v41 }
  0x1e   : > { %1208 = vmatprep.subr.bf16.mxu1 %v1354_v18 }
  0x1f   : > { %411 = vmatpush1.bf16.msra.mxu0 %v1300_v14 }
  0x20   : > { %412 = vmatprep.subr.bf16.mxu0 %v1301_v15 }
  0x21   : > { %1209 = vmatpush3.bf16.msra.mxu1 %v1310_v42 }
  0x22   : > { %1210 = vmatprep.subr.bf16.mxu1 %v1354_v18 }
  0x23   : > { %413 = vmatpush1.bf16.msra.mxu0 %v1303_v16 }
  0x24   : > { %1218 = vmatprep.subr.bf16.mxu0 %v1354_v18 }
  0x25   : > { %1211 = vmatpush3.bf16.msra.mxu1 %v1311_v43 }
  0x26   : > { %431 = vmatmul.mubr.bf16.vlgmr.msra.gmra.mrb[0].mxu0 %v1448_v17  ;;  %1212 = vmatprep.subr.bf16.mxu1 %v1354_v18 }
  0x27   : > { %1220 = vmatprep.mubr.msk.bf16.mxu0 %vm1355_vm0, %v1354_v18 }
  0x29   : > { %1213 = vmatpush3.bf16.msra.mxu1 %v1312_v44 }
  0x2a   : > { %1224 = vmatprep.subr.bf16.mxu1 %v1354_v18 }
  0x2c   : > { %1215 = vmatmul.mubr.bf16.vlgmr.msra.gmra.mrb[0].mxu1 %v1448_v17 }
  0x2d   : > { %1226 = vmatprep.mubr.msk.bf16.mxu1 %vm1355_vm0, %v1354_v18 }
  0xf9   : > { %v432_v25 = vpop.f32.mrb[0].mxu0 }
  0xfa   : > { %v434_v27 = vpop.f32.mrb[1].mxu0  ;;  %v433_v29 = vadd.f32 %v432_v25, %v252_v24 }
  0xfb   : > { %v436_v28 = vpop.f32.mrb[2].mxu0  ;;  %v435_v32 = vadd.f32 %v434_v27, %v256_v26 }
  0xfc   : > { %v437_v30 = vadd.f32 %v436_v28, %v252_v24  ;;  %v438_v31 = vpop.f32.mrb[3].mxu0 }
  0xfd   : > { %v439_v33 = vadd.f32 %v438_v31, %v256_v26 }
  0xfe   : > { %v482_v34 = vpack.c.bf16 %v437_v30, %v433_v29 }
  0xff   : > { %v483_v35 = vpack.c.bf16 %v439_v33, %v435_v32  ;;  %v475_v3 = vpop.f32.mrb[0].mxu1 }
 0x100   : > { %v476_v4 = vadd.f32 %v475_v3, %v260_v2  ;;  %v1216_v5 = vpop.f32.mrb[1].mxu1 }
 0x101   : > { %768 = vrot.lane.b32.xlu1 %v483_v35, %s1356_s6  ;;  %627 = vrot.lane.b32.xlu0 %v483_v35, %s1357_s7  ;;  %v497_v36 = vsel %vm492_vm1, %v483_v35, 0  ;;  %v478_v6 = vpop.f32.mrb[2].mxu1 }
 0x102   : > { %1219 = vmatpush3.bf16.xpose.msra.mxu0 %v497_v36  ;;  %v479_v7 = vadd.f32 %v478_v6, %v260_v2  ;;  %v1217_v8 = vpop.f32.mrb[3].mxu1 }
 0x103   : > { %1230 = vmatprep.subr.bf16.mxu0 %v1354_v18 }
 0x104   : > { %v1534_v9 = vpack.c.bf16 %v479_v7, %v476_v4 }
 0x105   : > { %766 = vrot.lane.b32.xlu1 %v482_v34, %s1356_s6  ;;  %624 = vrot.lane.b32.xlu0 %v482_v34, %s1357_s7 }
 0x106   : > { %1225 = vmatpush3.bf16.msra.mxu1 %v1534_v9 }
 0x107   : > { %1236 = vmatprep.subr.bf16.mxu1 %v1354_v18 }
 0x109   : > { %906 = vrot.lane.b32.xlu1 %v482_v34, %s1358_s8  ;;  %908 = vrot.lane.b32.xlu0 %v483_v35, %s1358_s8 }
 0x10a   : > { %1221 = vmatmul.mubr.msk.bf16.vlgmr.msra.gmra.mrb[4].mxu0 %vm492_vm1, %v482_v34 }
 0x10b   : > { %1232 = vmatprep.mubr.msk.bf16.mxu0 %vm1355_vm0, %v1354_v18 }
 0x173   : > { %v628_v45 = vpop.permute.xlu0 %627  ;;  %v769_v47 = vpop.permute.xlu1 %768 }
 0x174   : > { %v633_v46 = vsel %vm492_vm1, %v628_v45, 0  ;;  %v774_v49 = vsel %vm492_vm1, %v769_v47, 0 }
 0x175   : > { %1231 = vmatpush3.bf16.xpose.msra.mxu0 %v633_v46 }
 0x176   : > { %1242 = vmatprep.subr.bf16.mxu0 %v1354_v18 }
 0x177   : > { %v625_v48 = vpop.permute.xlu0 %624  ;;  %v767_v51 = vpop.permute.xlu1 %766 }
 0x17b   : > { %v909_v50 = vpop.permute.xlu0 %908  ;;  %v907_v53 = vpop.permute.xlu1 %906 }
 0x17c   : > { %1233 = vmatmul.mubr.msk.bf16.vlgmr.msra.gmra.mrb[8].mxu0 %vm492_vm1, %v625_v48  ;;  %v914_v52 = vsel %vm492_vm1, %v909_v50, 0 }
 0x17d   : > { %1243 = vmatpush3.bf16.xpose.msra.mxu0 %v774_v49  ;;  %1244 = vmatprep.mubr.msk.bf16.mxu0 %vm1355_vm0, %v1354_v18 }
 0x17e   : > { %1254 = vmatprep.subr.bf16.mxu0 %v1354_v18 }
 0x184   : > { %1245 = vmatmul.mubr.msk.bf16.vlgmr.msra.gmra.mrb[12].mxu0 %vm492_vm1, %v767_v51 }
 0x185   : > { %1255 = vmatpush3.bf16.xpose.msra.mxu0 %v914_v52  ;;  %1256 = vmatprep.mubr.msk.bf16.mxu0 %vm1355_vm0, %v1354_v18 }
 0x18c   : > { %1257 = vmatmul.mubr.msk.bf16.vlgmr.msra.gmra.mrb[16].mxu0 %vm492_vm1, %v907_v53 }
 0x1dd   : > { %v533_v55 = vpop.f32.mrb[4].mxu0 }
 0x1de   : > { %v540_v56 = vmul.f32 0.17677669, %v533_v55  ;;  %v1222_v57 = vpop.f32.mrb[5].mxu0 }
 0x1df   : > { %v536_v58 = vpop.f32.mrb[6].mxu0 }
 0x1e0   : > { %v541_v59 = vmul.f32 0.17677669, %v536_v58  ;;  %v1223_v60 = vpop.f32.mrb[7].mxu0  ;;  %v542_v61 = vadd.f32 %v1144_v54, %v540_v56 }
 0x1e2   : > { %v545_v62 = vsel %vm544_vm2, %v542_v61, -inf  ;;  %v543_v63 = vadd.f32 %v1144_v54, %v541_v59 }
 0x1e3   : > { %546 = vmax.xlane.f32.xlu0 %v545_v62 }
 0x1e4   : > { %v548_v0 = vsel %vm544_vm2, %v543_v63, -inf }
 0x1e5   : > { %549 = vmax.xlane.f32.xlu1 %v548_v0 }
 0x24f   : > { %v669_v10 = vpop.f32.mrb[8].mxu0 }
 0x250   : > { %v676_v11 = vmul.f32 0.17677669, %v669_v10  ;;  %v1234_v12 = vpop.f32.mrb[9].mxu0 }
 0x251   : > { %v672_v13 = vpop.f32.mrb[10].mxu0 }
 0x252   : > { %v677_v14 = vmul.f32 0.17677669, %v672_v13  ;;  %v1235_v15 = vpop.f32.mrb[11].mxu0  ;;  %v678_v16 = vadd.f32 %v1144_v54, %v676_v11 }
 0x254   : > { %v680_v17 = vsel %vm544_vm2, %v678_v16, -inf  ;;  %v679_v19 = vadd.f32 %v1144_v54, %v677_v14 }
 0x255   : > { %681 = vmax.xlane.f32.xlu0 %v680_v17 }
 0x256   : > { %v683_v23 = vsel %vm544_vm2, %v679_v19, -inf }
 0x257   : > { %v810_v20 = vpop.f32.mrb[12].mxu0 }
 0x258   : > { %v817_v21 = vmul.f32 0.17677669, %v810_v20  ;;  %v1246_v22 = vpop.f32.mrb[13].mxu0 }
 0x259   : > { %684 = vmax.xlane.f32.xlu0 %v683_v23  ;;  %v813_v24 = vpop.f32.mrb[14].mxu0 }
 0x25a   : > { %v818_v25 = vmul.f32 0.17677669, %v813_v24  ;;  %v1247_v26 = vpop.f32.mrb[15].mxu0  ;;  %v819_v27 = vadd.f32 %v1144_v54, %v817_v21 }
 0x25c   : > { %v821_v28 = vsel %vm544_vm2, %v819_v27, -inf  ;;  %v820_v29 = vadd.f32 %v1144_v54, %v818_v25 }
 0x25d   : > { %822 = vmax.xlane.f32.xlu1 %v821_v28 }
 0x25e   : > { %v824_v30 = vsel %vm544_vm2, %v820_v29, -inf }
 0x25f   : > { %825 = vmax.xlane.f32.xlu0 %v824_v30  ;;  %v950_v31 = vpop.f32.mrb[16].mxu0 }
 0x260   : > { %v957_v32 = vmul.f32 0.17677669, %v950_v31  ;;  %v1258_v33 = vpop.f32.mrb[17].mxu0 }
 0x261   : > { %v953_v34 = vpop.f32.mrb[18].mxu0 }
 0x262   : > { %v958_v35 = vmul.f32 0.17677669, %v953_v34  ;;  %v1259_v36 = vpop.f32.mrb[19].mxu0  ;;  %v959_v37 = vadd.f32 %v1144_v54, %v957_v32 }
 0x264   : > { %v961_v38 = vsel %vm544_vm2, %v959_v37, -inf  ;;  %v960_v39 = vadd.f32 %v1144_v54, %v958_v35 }
 0x265   : > { %962 = vmax.xlane.f32.xlu1 %v961_v38 }
 0x266   : > { %v964_v40 = vsel %vm544_vm2, %v960_v39, -inf }
 0x267   : > { %965 = vmax.xlane.f32.xlu0 %v964_v40 }
 0x270   : > { %v547_v41 = vpop.xlane.xlu0 %546 }
 0x271   : > { %v551_v42 = vsub.f32 %v542_v61, %v547_v41 }
 0x272   : > { %v550_v43 = vpop.xlane.xlu1 %549 }
 0x273   : > { %v553_v44 = vmul.f32 1.442695, %v551_v42  ;;  %v552_v45 = vsub.f32 %v543_v63, %v550_v43 }
 0x275   : > { %1313 = vpow2.f32 %v553_v44  ;;  %v555_v46 = vmul.f32 1.442695, %v552_v45 }
 0x277   : > { %1315 = vpow2.f32 %v555_v46 }
 0x27f   : > { %v1314_v47 = vpop.eup %1313 }
 0x280   : > { %v557_v48 = vsel %vm544_vm2, %v1314_v47, 0.0 }
 0x281   : > { %v1316_v49 = vpop.eup %1315  ;;  %558 = vadd.xlane.f32.xlu1 %v557_v48 }
 0x282   : > { %v560_v50 = vsel %vm544_vm2, %v1316_v49, 0.0 }
 0x283   : > { %561 = vadd.xlane.f32.xlu0 %v560_v50 }
 0x292   : > { %704 = vrot.lane.b32.xlu1 %v1534_v9, %s1357_s7 }
 0x2e2   : > { %v682_v51 = vpop.xlane.xlu0 %681 }
 0x2e3   : > { %v686_v52 = vsub.f32 %v678_v16, %v682_v51 }
 0x2e5   : > { %v688_v53 = vmul.f32 1.442695, %v686_v52 }
 0x2e6   : > { %v685_v54 = vpop.xlane.xlu0 %684 }
 0x2e7   : > { %1317 = vpow2.f32 %v688_v53  ;;  %v687_v55 = vsub.f32 %v679_v19, %v685_v54 }
 0x2e9   : > { %v690_v56 = vmul.f32 1.442695, %v687_v55 }
 0x2ea   : > { %v823_v57 = vpop.xlane.xlu1 %822 }
 0x2eb   : > { %1319 = vpow2.f32 %v690_v56  ;;  %v827_v58 = vsub.f32 %v819_v27, %v823_v57 }
 0x2ec   : > { %v826_v59 = vpop.xlane.xlu0 %825 }
 0x2ed   : > { %v829_v60 = vmul.f32 1.442695, %v827_v58  ;;  %v828_v61 = vsub.f32 %v820_v29, %v826_v59 }
 0x2ef   : > { %1321 = vpow2.f32 %v829_v60  ;;  %v831_v62 = vmul.f32 1.442695, %v828_v61 }
 0x2f1   : > { %v1318_v63 = vpop.eup %1317  ;;  %1323 = vpow2.f32 %v831_v62 }
 0x2f2   : > { %v963_v0 = vpop.xlane.xlu1 %962  ;;  %v692_v1 = vsel %vm544_vm2, %v1318_v63, 0.0 }
 0x2f3   : > { %v967_v2 = vsub.f32 %v959_v37, %v963_v0  ;;  %693 = vadd.xlane.f32.xlu1 %v692_v1 }
 0x2f4   : > { %v966_v3 = vpop.xlane.xlu0 %965 }
 0x2f5   : > { %v1320_v4 = vpop.eup %1319  ;;  %v969_v5 = vmul.f32 1.442695, %v967_v2  ;;  %v968_v6 = vsub.f32 %v960_v39, %v966_v3 }
 0x2f6   : > { %v695_v7 = vsel %vm544_vm2, %v1320_v4, 0.0 }
 0x2f7   : > { %1325 = vpow2.f32 %v969_v5  ;;  %v971_v8 = vmul.f32 1.442695, %v968_v6  ;;  %696 = vadd.xlane.f32.xlu0 %v695_v7 }
 0x2f9   : > { %v1322_v10 = vpop.eup %1321  ;;  %1327 = vpow2.f32 %v971_v8 }
 0x2fa   : > { %v833_v11 = vsel %vm544_vm2, %v1322_v10, 0.0 }
 0x2fb   : > { %v1324_v12 = vpop.eup %1323  ;;  %834 = vadd.xlane.f32.xlu1 %v833_v11 }
 0x2fc   : > { %v836_v13 = vsel %vm544_vm2, %v1324_v12, 0.0 }
 0x2fd   : > { %837 = vadd.xlane.f32.xlu0 %v836_v13 }
 0x301   : > { %v1326_v14 = vpop.eup %1325 }
 0x302   : > { %v973_v15 = vsel %vm544_vm2, %v1326_v14, 0.0 }
 0x303   : > { %v1328_v16 = vpop.eup %1327  ;;  %974 = vadd.xlane.f32.xlu1 %v973_v15 }
 0x304   : > { %v976_v17 = vsel %vm544_vm2, %v1328_v16, 0.0 }
 0x305   : > { %977 = vadd.xlane.f32.xlu0 %v976_v17 }
 0x30e   : > { %v559_v19 = vpop.xlane.xlu1 %558 }
 0x30f   : > { %1329 = vrcp.f32 %v559_v19 }
 0x310   : > { %v562_v20 = vpop.xlane.xlu0 %561 }
 0x311   : > { %1331 = vrcp.f32 %v562_v20 }
 0x312   : > { %v705_v26 = vpop.permute.xlu1 %704 }
 0x314   : > { %984 = vrot.lane.b32.xlu1 %v1534_v9, %s1358_s8 }
 0x319   : > { %v1330_v21 = vpop.eup %1329 }
 0x31a   : > { %v565_v23 = vmul.f32 %v1330_v21, %v1314_v47 }
 0x31b   : > { %v1332_v22 = vpop.eup %1331  ;;  %844 = vrot.lane.b32.xlu0 %v1534_v9, %s1356_s6 }
 0x31c   : > { %v566_v24 = vmul.f32 %v1332_v22, %v1316_v49 }
 0x31e   : > { %v567_v25 = vpack.c.bf16 %v566_v24, %v565_v23 }
 0x320   : > { %1227 = vmatmul.mubr.msk.bf16.vlgmr.msra.gmra.mrb[4].mxu1 %vm544_vm2, %v567_v25 }
 0x321   : > { %1237 = vmatpush3.bf16.msra.mxu1 %v705_v26  ;;  %1238 = vmatprep.mubr.msk.bf16.mxu1 %vm1355_vm0, %v1354_v18 }
 0x322   : > { %1248 = vmatprep.subr.bf16.mxu1 %v1354_v18 }
 0x380   : > { %v694_v27 = vpop.xlane.xlu1 %693 }
 0x381   : > { %1333 = vrcp.f32 %v694_v27 }
 0x384   : > { %v697_v28 = vpop.xlane.xlu0 %696 }
 0x385   : > { %1335 = vrcp.f32 %v697_v28 }
 0x388   : > { %v835_v29 = vpop.xlane.xlu1 %834 }
 0x389   : > { %1337 = vrcp.f32 %v835_v29 }
 0x38a   : > { %v838_v30 = vpop.xlane.xlu0 %837 }
 0x38b   : > { %1339 = vrcp.f32 %v838_v30  ;;  %v1334_v9 = vpop.eup %1333 }
 0x38c   : > { %v700_v32 = vmul.f32 %v1334_v9, %v1318_v63 }
 0x38f   : > { %v1336_v31 = vpop.eup %1335 }
 0x390   : > { %v701_v33 = vmul.f32 %v1336_v31, %v1320_v4  ;;  %v975_v34 = vpop.xlane.xlu1 %974 }
 0x391   : > { %1341 = vrcp.f32 %v975_v34 }
 0x392   : > { %v978_v35 = vpop.xlane.xlu0 %977  ;;  %v702_v36 = vpack.c.bf16 %v701_v33, %v700_v32 }
 0x393   : > { %1343 = vrcp.f32 %v978_v35  ;;  %v1338_v37 = vpop.eup %1337 }
 0x394   : > { %1239 = vmatmul.mubr.msk.bf16.vlgmr.msra.gmra.mrb[8].mxu1 %vm544_vm2, %v702_v36  ;;  %v841_v41 = vmul.f32 %v1338_v37, %v1322_v10  ;;  %v985_v44 = vpop.permute.xlu1 %984 }
 0x395   : > { %v1340_v38 = vpop.eup %1339  ;;  %1250 = vmatprep.mubr.msk.bf16.mxu1 %vm1355_vm0, %v1354_v18 }
 0x396   : > { %v842_v39 = vmul.f32 %v1340_v38, %v1324_v12  ;;  %v845_v40 = vpop.permute.xlu0 %844 }
 0x397   : > { %1249 = vmatpush3.bf16.msra.mxu1 %v845_v40 }
 0x398   : > { %1260 = vmatprep.subr.bf16.mxu1 %v1354_v18  ;;  %v843_v42 = vpack.c.bf16 %v842_v39, %v841_v41 }
 0x39b   : > { %v1342_v43 = vpop.eup %1341 }
 0x39c   : > { %1251 = vmatmul.mubr.msk.bf16.vlgmr.msra.gmra.mrb[12].mxu1 %vm544_vm2, %v843_v42  ;;  %v981_v47 = vmul.f32 %v1342_v43, %v1326_v14 }
 0x39d   : > { %v1344_v45 = vpop.eup %1343  ;;  %1261 = vmatpush3.bf16.msra.mxu1 %v985_v44  ;;  %1262 = vmatprep.mubr.msk.bf16.mxu1 %vm1355_vm0, %v1354_v18 }
 0x39e   : > { %v982_v46 = vmul.f32 %v1344_v45, %v1328_v16 }
 0x3a0   : > { %v983_v48 = vpack.c.bf16 %v982_v46, %v981_v47 }
 0x3a4   : > { %1263 = vmatmul.mubr.msk.bf16.vlgmr.msra.gmra.mrb[16].mxu1 %vm544_vm2, %v983_v48 }
 0x3f3   : > { %v605_v49 = vpop.f32.mrb[4].mxu1 }
 0x3f4   : > { %v1165_v50 = vpack.c.bf16 %v605_v49, %v605_v49  ;;  %v1228_v51 = vpop.f32.mrb[5].mxu1 }
 0x3f5   : > { %v608_v52 = vpop.f32.mrb[6].mxu1 }
 0x3f6   : > { %621 = vst.msk [vmem:[%s1575_s10] sm:$0xf] %vm620_vm3, %v1165_v50  ;;  %v1166_v18 = vpack.c.bf16 %v608_v52, %v608_v52  ;;  %v1229_v53 = vpop.f32.mrb[7].mxu1 }
 0x3f8   : > { %622 = vst.msk [vmem:[%s1575_s10 + $0x4] sm:$0xf] %vm620_vm3, %v1166_v18 }
 0x467   : > { %v744_v54 = vpop.f32.mrb[8].mxu1 }
 0x468   : > { %v1167_v55 = vpack.c.bf16 %v744_v54, %v744_v54  ;;  %v1240_v56 = vpop.f32.mrb[9].mxu1 }
 0x469   : > { %v747_v57 = vpop.f32.mrb[10].mxu1 }
 0x46a   : > { %v1168_v58 = vpack.c.bf16 %v747_v57, %v747_v57  ;;  %757 = vrot.lane.b32.xlu1 %v1167_v55, %s1358_s8  ;;  %v1241_v59 = vpop.f32.mrb[11].mxu1 }
 0x46c   : > { %759 = vrot.lane.b32.xlu0 %v1168_v58, %s1358_s8 }
 0x46f   : > { %v884_v60 = vpop.f32.mrb[12].mxu1 }
 0x470   : > { %v1169_v61 = vpack.c.bf16 %v884_v60, %v884_v60  ;;  %v1252_v62 = vpop.f32.mrb[13].mxu1 }
 0x471   : > { %v887_v63 = vpop.f32.mrb[14].mxu1 }
 0x472   : > { %v1170_v0 = vpack.c.bf16 %v887_v63, %v887_v63  ;;  %897 = vrot.lane.b32.xlu1 %v1169_v61, %s1356_s6  ;;  %v1253_v1 = vpop.f32.mrb[15].mxu1 }
 0x474   : > { %899 = vrot.lane.b32.xlu0 %v1170_v0, %s1356_s6 }
 0x477   : > { %v1024_v2 = vpop.f32.mrb[16].mxu1 }
 0x478   : > { %v1171_v3 = vpack.c.bf16 %v1024_v2, %v1024_v2  ;;  %v1264_v4 = vpop.f32.mrb[17].mxu1 }
 0x479   : > { %v1027_v5 = vpop.f32.mrb[18].mxu1 }
 0x47a   : > { %v1172_v6 = vpack.c.bf16 %v1027_v5, %v1027_v5  ;;  %1037 = vrot.lane.b32.xlu1 %v1171_v3, %s1357_s7  ;;  %v1265_v7 = vpop.f32.mrb[19].mxu1 }
 0x47c   : > { %1039 = vrot.lane.b32.xlu0 %v1172_v6, %s1357_s7 }
 0x4dc   : > { %v758_v8 = vpop.permute.xlu1 %757 }
 0x4dd   : > { %764 = vst.msk [vmem:[%s1575_s10] sm:$0xf] %vm763_vm4, %v758_v8 }
 0x4de   : > { %v760_v10 = vpop.permute.xlu0 %759 }
 0x4df   : > { %765 = vst.msk [vmem:[%s1575_s10 + $0x4] sm:$0xf] %vm763_vm4, %v760_v10 }
 0x4e4   : > { %v898_v11 = vpop.permute.xlu1 %897 }
 0x4e5   : > { %904 = vst.msk [vmem:[%s1575_s10] sm:$0xf] %vm903_vm5, %v898_v11 }
 0x4e6   : > { %v900_v12 = vpop.permute.xlu0 %899 }
 0x4e7   : > { %905 = vst.msk [vmem:[%s1575_s10 + $0x4] sm:$0xf] %vm903_vm5, %v900_v12 }
 0x4ec   : > { %v1038_v13 = vpop.permute.xlu1 %1037 }
 0x4ed   : > { %1044 = vst.msk [vmem:[%s1575_s10] sm:$0xf] %vm1043_vm6, %v1038_v13 }
 0x4ee   : > { %v1040_v14 = vpop.permute.xlu0 %1039 }
 0x4ef   : > { %1045 = vst.msk [vmem:[%s1575_s10 + $0x4] sm:$0xf] %vm1043_vm6, %v1040_v14 }
 0x4f0 PF: > { %s14_s15 = sadd.s32 1, %s1351_s15  }
 0x4f1   : > { %p11_p4 = scmp.ge.s32.totalorder %s14_s15, 4  }
 0x4f3   :  { %13 = sbr.rel (!%p11_p4) target bundleno = 1 (0x1), region = 69 }

// kernel: protbert_forward.16
= control target key start
LH: loop header
LB: loop body
LE: loop exit
PB: predicated region body
PF: predicated region fallthrough
CT: control target
= control target key end

     0   :  { %s602_s18 = smov 0   ;;  %s659_s0 = inlined_call_operand.vmem [shape: bf16[32,128], index: 0, kind: input, shape index: {}]   ;;  %s660_s1 = inlined_call_operand.vmem [shape: bf16[128,128], index: 1, kind: input, shape index: {}]   ;;  %s661_s2 = inlined_call_operand.vmem [shape: f32[1,128], index: 2, kind: input, shape index: {}, may-alias: {2,4}]   ;;  %s662_s3 = inlined_call_operand.vmem [shape: f32[1,128], index: 3, kind: input, shape index: {}]   ;;  %s663_s4 = inlined_call_operand.vmem [shape: f32[1,128], index: 4, kind: input, shape index: {}, may-alias: {2,4}]   ;;  %s664_s5 = inlined_call_operand.vmem [shape: bf16[32,128], index: 5, kind: output, shape index: {}]  }
   0x1 LB: > { %s474_s19 = sadd.s32 4294967295, %s568_s18   ;;  %p478_p0 = scmp.ge.s32.totalorder %s568_s18, 1  ;;  %s568_s18 = sphi %s602_s18, %s15_s18  }
   0x2   : > { %p188_p1 = scmp.lt.s32.totalorder %s568_s18, 3 }
   0x4   : > { %p189_p2 = pnand %p478_p0, %p188_p1 }
   0x5   : > { %v545_v0 = vld [vmem:[%s660_s1] sm:$0xff] (!%p189_p2)   ;;  %v570_v1 = vmov (!%p189_p2), 0.0   ;;  %v546_v2 = vld [vmem:[%s660_s1 + $0x8] sm:$0xff] (!%p189_p2)   ;;  %vm571_vm0 = vmmov (!%p189_p2), 0   ;;  %s479_s24 = sshll.u32 (!%p189_p2), %s474_s19, 1  ;;  %v547_v3 = vld [vmem:[%s660_s1 + $0x10] sm:$0xff] (!%p189_p2)  }
   0x6   : > { %192 = sbr.rel (%p189_p2) target bundleno = 597 (0x255), region = 40  ;;  %515 = vmatprep.subr.bf16.mxu0 (!%p189_p2), %v570_v1  ;;  %531 = vmatprep.mubr.msk.bf16.mxu0 (!%p189_p2), %vm571_vm0, %v570_v1  ;;  %p217_p3 = scmp.lt.s32.totalorder (!%p189_p2), %s479_s24, 3  ;;  %v548_v4 = vld [vmem:[%s660_s1 + $0x18] sm:$0xff] (!%p189_p2)   ;;  %v549_v5 = vld [vmem:[%s660_s1 + $0x20] sm:$0xff] (!%p189_p2)   ;;  %v550_v6 = vld [vmem:[%s660_s1 + $0x28] sm:$0xff] (!%p189_p2)  }
   0x7   : > { %516 = vmatpush3.bf16.msra.mxu0 (!%p189_p2), %v545_v0  ;;  %v551_v7 = vld [vmem:[%s660_s1 + $0x30] sm:$0xff] (!%p189_p2)   ;;  %v552_v8 = vld [vmem:[%s660_s1 + $0x38] sm:$0xff] (!%p189_p2)   ;;  %v483_v10 = vld [vmem:[%s661_s2] ss:$0 sm:$0xff] (!%p189_p2) }
   0x8   : > { %517 = vmatprep.subr.bf16.mxu0 (!%p189_p2), %v570_v1  ;;  %v493_v51 = vld [vmem:[%s662_s3] ss:$0 sm:$0xff] (!%p189_p2) }
   0x9   : > { %v494_v55 = vld [vmem:[%s663_s4] ss:$0 sm:$0xff] (!%p189_p2) }
   0xb   : > { %518 = vmatpush3.bf16.msra.mxu0 (!%p189_p2), %v546_v2 }
   0xc   : > { %519 = vmatprep.subr.bf16.mxu0 (!%p189_p2), %v570_v1 }
   0xd   : > { %s666_s24 = smov (!%p217_p3, %s479_s24), 3 }
   0xe   : > { %s480_s27 = sshll.u32 %s666_s24, 2 }
   0xf   : > { %s220_s30 = scalar_lea.vmem %s659_s0, %s480_s27  ;;  %520 = vmatpush3.bf16.msra.mxu0 %v547_v3  ;;  %s226_s26 = scalar_lea.vmem %s664_s5, %s480_s27 }
  0x10   : > { %521 = vmatprep.subr.bf16.mxu0 %v570_v1  ;;  %v553_v9 = vld [vmem:[%s220_s30] sm:$0xff]  }
  0x13   : > { %522 = vmatpush3.bf16.msra.mxu0 %v548_v4 }
  0x14   : > { %523 = vmatprep.subr.bf16.mxu0 %v570_v1 }
  0x17   : > { %524 = vmatpush3.bf16.msra.mxu0 %v549_v5 }
  0x18   : > { %525 = vmatprep.subr.bf16.mxu0 %v570_v1 }
  0x1b   : > { %526 = vmatpush3.bf16.msra.mxu0 %v550_v6 }
  0x1c   : > { %527 = vmatprep.subr.bf16.mxu0 %v570_v1 }
  0x1f   : > { %528 = vmatpush3.bf16.msra.mxu0 %v551_v7 }
  0x20   : > { %529 = vmatprep.subr.bf16.mxu0 %v570_v1 }
  0x23   : > { %530 = vmatpush3.bf16.msra.mxu0 %v552_v8 }
  0x26   : > { %532 = vmatmul.mubr.bf16.vlgmr.msra.gmra.mrb[0].mxu0 %v553_v9 }
  0xf9   : > { %v342_v11 = vpop.f32.mrb[0].mxu0 }
  0xfa   : > { %v343_v12 = vadd.f32 %v483_v10, %v342_v11  ;;  %v533_v13 = vpop.f32.mrb[1].mxu0 }
  0xfb   : > { %v345_v14 = vpop.f32.mrb[2].mxu0 }
  0xfc   : > { %v349_v15 = vmul.f32 %v343_v12, %v343_v12  ;;  %v346_v16 = vadd.f32 %v483_v10, %v345_v14  ;;  %v534_v17 = vpop.f32.mrb[3].mxu0 }
  0xfe   : > { %v351_v18 = vmul.f32 %v349_v15, %v343_v12  ;;  %v350_v19 = vmul.f32 %v346_v16, %v346_v16 }
 0x100   : > { %v353_v20 = vmul.f32 0.044715, %v351_v18  ;;  %v352_v21 = vmul.f32 %v350_v19, %v346_v16 }
 0x102   : > { %v354_v22 = vmul.f32 0.044715, %v352_v21  ;;  %v355_v23 = vadd.f32 %v353_v20, %v343_v12 }
 0x104   : > { %v357_v24 = vmul.f32 0.7978846, %v355_v23  ;;  %v356_v25 = vadd.f32 %v354_v22, %v346_v16 }
 0x106   : > { %554 = vtanh.f32 %v357_v24  ;;  %v358_v26 = vmul.f32 0.7978846, %v356_v25 }
 0x108   : > { %556 = vtanh.f32 %v358_v26 }
 0x110   : > { %v555_v27 = vpop.eup %554 }
 0x111   : > { %v361_v28 = vadd.f32 1.0, %v555_v27 }
 0x112   : > { %v557_v29 = vpop.eup %556 }
 0x113   : > { %v363_v30 = vmul.f32 0.5, %v361_v28  ;;  %v362_v31 = vadd.f32 1.0, %v557_v29 }
 0x115   : > { %v365_v32 = vmul.f32 %v363_v30, %v343_v12  ;;  %v364_v33 = vmul.f32 0.5, %v362_v31 }
 0x117   : > { %367 = vadd.xlane.f32.xlu0 %v365_v32  ;;  %v366_v34 = vmul.f32 %v364_v33, %v346_v16 }
 0x11b   : > { %369 = vadd.xlane.f32.xlu0 %v366_v34 }
 0x1a4   : > { %v368_v35 = vpop.xlane.xlu0 %367 }
 0x1a5   : > { %v372_v36 = vmul.f32 0.0078125, %v368_v35 }
 0x1a7   : > { %v374_v37 = vsub.f32 %v365_v32, %v372_v36 }
 0x1a8   : > { %v370_v38 = vpop.xlane.xlu0 %369 }
 0x1a9   : > { %v373_v39 = vmul.f32 0.0078125, %v370_v38  ;;  %v376_v40 = vmul.f32 %v374_v37, %v374_v37 }
 0x1ab   : > { %v375_v41 = vsub.f32 %v366_v34, %v373_v39  ;;  %378 = vadd.xlane.f32.xlu1 %v376_v40 }
 0x1ad   : > { %v377_v42 = vmul.f32 %v375_v41, %v375_v41 }
 0x1af   : > { %380 = vadd.xlane.f32.xlu1 %v377_v42 }
 0x238   : > { %v379_v43 = vpop.xlane.xlu1 %378 }
 0x239   : > { %v382_v44 = vmul.f32 0.0078125, %v379_v43 }
 0x23b   : > { %v384_v45 = vadd.f32 1e-12, %v382_v44 }
 0x23c   : > { %v381_v46 = vpop.xlane.xlu1 %380 }
 0x23d   : > { %558 = vrsqrt.f32 %v384_v45  ;;  %v383_v47 = vmul.f32 0.0078125, %v381_v46 }
 0x23f   : > { %v385_v48 = vadd.f32 1e-12, %v383_v47 }
 0x241   : > { %560 = vrsqrt.f32 %v385_v48 }
 0x247   : > { %v559_v49 = vpop.eup %558 }
 0x248   : > { %v388_v50 = vmul.f32 %v559_v49, %v374_v37 }
 0x24a   : > { %v397_v53 = vmul.f32 %v493_v51, %v388_v50 }
 0x24b   : > { %v561_v52 = vpop.eup %560 }
 0x24c   : > { %v389_v54 = vmul.f32 %v561_v52, %v375_v41  ;;  %v406_v57 = vadd.f32 %v494_v55, %v397_v53 }
 0x24e   : > { %v398_v56 = vmul.f32 %v493_v51, %v389_v54 }
 0x250   : > { %v407_v58 = vadd.f32 %v494_v55, %v398_v56 }
 0x252   : > { %v504_v59 = vpack.c.bf16 %v407_v58, %v406_v57 }
 0x254   : > { %505 = vst [vmem:[%s226_s26] sm:$0xff] %v504_v59  }
 0x255 PF: > { %s15_s18 = sadd.s32 1, %s568_s18  }
 0x256   : > { %p12_p4 = scmp.ge.s32.totalorder %s15_s18, 4  }
 0x258   :  { %14 = sbr.rel (!%p12_p4) target bundleno = 1 (0x1), region = 70 }

// kernel: protbert_forward.17
= control target key start
LH: loop header
LB: loop body
LE: loop exit
PB: predicated region body
PF: predicated region fallthrough
CT: control target
= control target key end

     0   :  { %8 = vsyncpa [#allocation3], 0  ;;  %s693_s0 = inlined_call_operand.vmem [shape: bf16[32,128], index: 0, kind: input, shape index: {}]   ;;  %s694_s1 = inlined_call_operand.vmem [shape: bf16[128,128], index: 1, kind: input, shape index: {}]   ;;  %s695_s2 = inlined_call_operand.vmem [shape: f32[1,128], index: 2, kind: input, shape index: {}]   ;;  %s696_s3 = inlined_call_operand.hbm [shape: f32[32,128], index: 3, kind: output, shape index: {}]  }
   0x1   :  { %10 = vsyncpa [#allocation3 + $0x1], 0  ;;  %s564_s12 = smov 0   ;;  %s566_s13 = smov 0  }
   0x2   :  { %s568_s14 = smov 0   ;;  %s570_s15 = smov 0  }
   0x3 LB: > { %s585_s16 = sadd.s32 4294967295, %s537_s15   ;;  %s371_s17 = sadd.s32 4294967294, %s537_s15   ;;  %s537_s15 = sphi %s570_s15, %s702_s15   ;;  %s533_s14 = sphi %s568_s14, %s701_s14   ;;  %s529_s13 = sphi %s566_s13, %s700_s13   ;;  %s525_s12 = sphi %s564_s12, %s699_s12  }
   0x4   : > { %s589_s18 = sadd.s32 1, %s537_s15   ;;  %s91_s19 = sadd.s32 1, %s533_s14 }
   0x5   : > { %s88_s20 = ssub.s32 %s537_s15, %s589_s18  ;;  %p101_p0 = scmp.ne.s32.totalorder %s533_s14, %s529_s13 }
   0x6   : > { %p89_p1 = scmp.eq.s32.totalorder %s88_s20, 0  ;;  %p102_p2 = scmp.eq.s32.totalorder %s585_s16, 1 }
   0x7   : > { %p107_p3 = scmp.ne.s32.totalorder %s529_s13, %s525_s12  ;;  %p108_p4 = scmp.eq.s32.totalorder %s371_s17, 1 }
   0x8   : > { %s600_s21 = scalar_select %p89_p1, %s533_s14, %s91_s19  }
   0x9   : > { %p602_p5 = por %p102_p2, %p101_p0  ;;  %p606_p6 = por %p108_p4, %p107_p3 }
   0xa   : > { %p374_p7 = scmp.ge.s32.totalorder %s537_s15, 1  ;;  %p141_p8 = scmp.lt.s32.totalorder %s537_s15, 3 }
   0xc   : > { %p142_p9 = pnand %p374_p7, %p141_p8 }
   0xd   : > { %v466_v0 = vld [vmem:[%s694_s1] sm:$0xff] (!%p142_p9)   ;;  %v539_v1 = vmov (!%p142_p9), 0.0   ;;  %v467_v2 = vld [vmem:[%s694_s1 + $0x8] sm:$0xff] (!%p142_p9)   ;;  %vm540_vm0 = vmmov (!%p142_p9), 0   ;;  %s376_s28 = sshll.u32 (!%p142_p9), %s585_s16, 1  ;;  %v468_v3 = vld [vmem:[%s694_s1 + $0x10] sm:$0xff] (!%p142_p9)  }
   0xe   : > { %145 = sbr.rel (%p142_p9) target bundleno = 277 (0x115), region = 32  ;;  %403 = vmatprep.subr.bf16.mxu0 (!%p142_p9), %v539_v1  ;;  %419 = vmatprep.mubr.msk.bf16.mxu0 (!%p142_p9), %vm540_vm0, %v539_v1  ;;  %p166_p10 = scmp.lt.s32.totalorder (!%p142_p9), %s376_s28, 3  ;;  %v469_v4 = vld [vmem:[%s694_s1 + $0x18] sm:$0xff] (!%p142_p9)   ;;  %v470_v5 = vld [vmem:[%s694_s1 + $0x20] sm:$0xff] (!%p142_p9)   ;;  %v471_v6 = vld [vmem:[%s694_s1 + $0x28] sm:$0xff] (!%p142_p9)  }
   0xf   : > { %404 = vmatpush3.bf16.msra.mxu0 (!%p142_p9), %v466_v0  ;;  %v472_v7 = vld [vmem:[%s694_s1 + $0x30] sm:$0xff] (!%p142_p9)   ;;  %v473_v8 = vld [vmem:[%s694_s1 + $0x38] sm:$0xff] (!%p142_p9)   ;;  %s162_s27 = sand.u32 (!%p142_p9), 1, %s529_s13   ;;  %v378_v10 = vld [vmem:[%s695_s2] ss:$0 sm:$0xff] (!%p142_p9)  ;;  %s393_s6 = sshll.u32 (!%p142_p9), %s585_s16, 8 }
  0x10   : > { %405 = vmatprep.subr.bf16.mxu0 (!%p142_p9), %v539_v1  ;;  %s650_s9 = scalar_lea.hbm (!%p142_p9), %s696_s3, %s393_s6  ;;  %s652_s10 = scalar_lea.sflag (!%p142_p9), [#allocation3], %s162_s27 }
  0x11   : > { %s541_s11 = smov (!%p142_p9), [#allocation2]  }
  0x12   : > { %s479_s17 = sshll.u32 (!%p142_p9), %s541_s11, 4  ;;  %s480_s17 = int_to_ptr.vmem [resolvable:$false] %s479_s17 }
  0x13   : > { %406 = vmatpush3.bf16.msra.mxu0 (!%p142_p9), %v467_v2  ;;  %s481_s19 = scalar_lea.vmem (!%p142_p9), %s480_s17, 512 }
  0x14   : > { %407 = vmatprep.subr.bf16.mxu0 (!%p142_p9), %v539_v1 }
  0x15   : > { %s704_s28 = smov (!%p166_p10, %s376_s28), 3 }
  0x16   : > { %s377_s4 = sshll.u32 %s704_s28, 2  ;;  %s375_s28 = sshll.u32 %s162_s27, 4 }
  0x17   : > { %s169_s7 = scalar_lea.vmem %s693_s0, %s377_s4  ;;  %408 = vmatpush3.bf16.msra.mxu0 %v468_v3  ;;  %s164_s4 = scalar_lea.vmem [#allocation2], %s375_s28 }
  0x18   : > { %409 = vmatprep.subr.bf16.mxu0 %v539_v1  ;;  %v474_v9 = vld [vmem:[%s169_s7] sm:$0xff]   ;;  %s309_s5 = sshll.u32 %s164_s4, 4  ;;  %s645_s5 = int_to_ptr.vmem [resolvable:$true] %s309_s5 }
  0x19   : > { %s475_s16 = scalar_lea.vmem %s645_s5, 256  ;;  %p482_p0 = scmp.lt.s32.totalorder %s645_s5, %s480_s17 }
  0x1a   : > { %p476_p11 = scmp.ne.s32.totalorder %s645_s5, %s475_s16  ;;  %p483_p1 = scmp.lt.s32.totalorder %s481_s19, %s475_s16 }
  0x1b   : > { %410 = vmatpush3.bf16.msra.mxu0 %v469_v4 }
  0x1c   : > { %411 = vmatprep.subr.bf16.mxu0 %v539_v1  ;;  %p477_p12 = pnand %p476_p11, %p602_p5  ;;  %p484_p2 = por %p483_p1, %p482_p0 }
  0x1e   : > { %p478_p13 = pneg %p477_p12 }
  0x1f   : > { %412 = vmatpush3.bf16.msra.mxu0 %v470_v5 }
  0x20   : > { %413 = vmatprep.subr.bf16.mxu0 %v539_v1  ;;  %p485_p3 = pnand %p484_p2, %p478_p13 }
  0x23   : > { %414 = vmatpush3.bf16.msra.mxu0 %v471_v6 }
  0x24   : > { %415 = vmatprep.subr.bf16.mxu0 %v539_v1 }
  0x27   : > { %416 = vmatpush3.bf16.msra.mxu0 %v472_v7 }
  0x28   : > { %417 = vmatprep.subr.bf16.mxu0 %v539_v1 }
  0x2b   : > { %418 = vmatpush3.bf16.msra.mxu0 %v473_v8 }
  0x2e   : > { %420 = vmatmul.mubr.bf16.vlgmr.msra.gmra.mrb[0].mxu0 %v474_v9 }
 0x101   : > { %v286_v11 = vpop.f32.mrb[0].mxu0 }
 0x102   : > { %v287_v12 = vadd.f32 %v378_v10, %v286_v11  ;;  %v421_v13 = vpop.f32.mrb[1].mxu0 }
 0x103   : > { %v289_v14 = vpop.f32.mrb[2].mxu0 }
 0x104   : > { %293 = vst [vmem:[%s164_s4] sm:$0xff] %v287_v12  ;;  %v290_v15 = vadd.f32 %v378_v10, %v289_v14  ;;  %v422_v16 = vpop.f32.mrb[3].mxu0 }
 0x106   : > { %294 = vst [vmem:[%s164_s4 + $0x8] sm:$0xff] %v290_v15 }
 0x107   : > { %488 = shalt.err (!%p485_p3)
}
 0x108   : > { %s489_s20 = scalar_lea.hbm %s650_s9, 256  ;;  %s493_s26 = scalar_lea.hbm %s696_s3, 512 }
 0x109   : > { %p490_p4 = scmp.ne.s32.totalorder %s650_s9, %s489_s20  ;;  %p494_p9 = scmp.lt.u32.totalorder %s650_s9, %s696_s3 }
 0x10a   : > { %p495_p10 = scmp.lt.u32.totalorder %s493_s26, %s489_s20  ;;  %p497_p12 = scmp.lt.u32.totalorder %s489_s20, %s650_s9 }
 0x10b   : > { %p491_p7 = pnand %p490_p4, %p602_p5 }
 0x10c   : > { %p496_p11 = por %p495_p10, %p494_p9 }
 0x10d   : > { %p492_p8 = pneg %p491_p7 }
 0x10e   : > { %p498_p13 = por %p497_p12, %p496_p11 }
 0x110   : > { %p499_p0 = pnand %p498_p13, %p492_p8 }
 0x112   : > { %502 = shalt.err (!%p499_p0)
}
 0x113   : > { %s542_s29 = smov 128   ;;  %s543_s30 = smov 8  }
 0x114   : > { %423 = dma.vmem_to_hbm [thread:$0]  (%p602_p5), %s645_s5, 256, %s650_s9, %s652_s10, %s542_s29, %s542_s29, %s543_s30  }
 0x115 PF: > { %p429_p1 = scmp.ge.s32.totalorder %s537_s15, 2  ;;  %s324_s4 = sand.u32 1, %s525_s12  }
 0x116   : > { %s325_s6 = scalar_lea.sflag [#allocation3], %s324_s4 }
 0x117   : > { %p426_p2 = pnand %p429_p1, %p606_p6 }
 0x119   : > { %520 = dma.done.wait (!%p426_p2), %s325_s6, 256  }
 0x11a   : > { %522 = vsyncadd (!%p426_p2), %s325_s6, 4294967040  ;;  %p13_p3 = scmp.ge.s32.totalorder %s589_s18, 4   ;;  %s699_s12 = smov %s529_s13 }
 0x11b   : > { %s700_s13 = smov %s533_s14  ;;  %s701_s14 = smov %s600_s21 }
 0x11c   : > { %s702_s15 = smov %s589_s18  ;;  %15 = sbr.rel (!%p13_p3) target bundleno = 3 (0x3), region = 67 }
 0x123   :  { %330 = vsyncpa [#allocation3], 1 }
 0x124   :  { %332 = vsyncpa [#allocation3 + $0x1], 1 }

</bundles_post_ra>
